<compile_context>
chip_gen: v7x
topology: tpu7x:2x2x1
jax: 0.10.0
libtpu: 0.0.40
codegen_flags: <defaults>
</compile_context>

<pallas_src>
import jax
import jax.numpy as jnp
from jax.experimental import pallas as pl
from jax.experimental.pallas import tpu as pltpu

# ---------------------------- model dimensions (small) ----------------------------
N_BATCH   = 2
C_IN      = 4
IMG_H     = 16
IMG_W     = 16
C_MID     = 32          # conv stem channels
FEAT_DIM  = 128         # stand-in for the 2048-d HMR feature
HIDDEN    = 128         # stand-in for the 1024-d regressor hidden
N_JOINTS  = 24
NPOSE     = N_JOINTS * 6        # 144 (6D rotation rep)
NBETA     = 10
NCAM      = 3
N_VERTS   = 128         # stand-in for 6890 SMPL vertices
N_ITER    = 3           # SPIN regressor IEF iterations
POSEFEAT  = (N_JOINTS - 1) * 9  # 207, SMPL pose-blendshape feature dim

# padded / packed dimensions (lane-dense layouts)
STATE_DIM    = 256      # [pose 0:144 | shape 144:154 | cam 154:157 | pad]
POSEFEAT_PAD = 256      # 207 -> 256
JOINT_PAD    = 128      # 24*3 = 72 -> 128


# ---------------------------- BlockSpec helper ----------------------------
def _full_spec(shape):
    """Full-array block for a grid=(1,) pallas_call."""
    nd = len(shape)
    return pl.BlockSpec(shape, lambda i, _nd=nd: (0,) * _nd)


# ---------------------------- Pallas kernel A: backbone + regressor ----------------------------
def _fused_backbone_regressor_kernel(
        patches_ref, pool_ref, convw_ref, convb_ref, featw_ref, featb_ref,
        init_ref, w1f_ref, w1s_ref, b1_ref, w2_ref, b2_ref, wdec_ref, bdec_ref,
        out_ref):
    # conv3x3 lowered to im2col matmul, then ReLU
    y = jnp.dot(patches_ref[...], convw_ref[...], preferred_element_type=jnp.float32)
    y = jnp.maximum(y + convb_ref[...], 0.0)                               # (n*HW, C_MID)
    # global average pool via constant pooling matrix (n, n*HW)
    pooled = jnp.dot(pool_ref[...], y, preferred_element_type=jnp.float32)  # (n, C_MID)
    # feature FC (the HMR feature stand-in)
    feat = jnp.dot(pooled, featw_ref[...],
                   preferred_element_type=jnp.float32) + featb_ref[...]      # (n, FEAT_DIM)

    # SPIN Regressor: 3 unrolled IEF iterations on a lane-dense [pose|shape|cam|pad] state.
    # Dropout layers are identity (eval mode); no activation between fc1/fc2 (matches SPIN).
    n = out_ref.shape[0]
    state = jnp.broadcast_to(init_ref[...], (n, out_ref.shape[1]))          # (n, STATE_DIM)
    # feature contribution to fc1 is loop-invariant -> hoist it
    h1_feat = jnp.dot(feat, w1f_ref[...],
                      preferred_element_type=jnp.float32) + b1_ref[...]      # (n, HIDDEN)
    for _ in range(N_ITER):
        h1 = h1_feat + jnp.dot(state, w1s_ref[...], preferred_element_type=jnp.float32)
        h2 = jnp.dot(h1, w2_ref[...], preferred_element_type=jnp.float32) + b2_ref[...]
        state = state + jnp.dot(h2, wdec_ref[...],
                                preferred_element_type=jnp.float32) + bdec_ref[...]
    out_ref[...] = state


def fused_backbone_regressor(patches, pool_mat, p):
    n = pool_mat.shape[0]
    ins = [patches, pool_mat,
           p["conv_w"], p["conv_b"], p["featfc_w"], p["featfc_b"],
           p["init_state"], p["w1_feat"], p["w1_state"], p["b1"],
           p["w2"], p["b2"], p["wdec"], p["bdec"]]
    return pl.pallas_call(
        _fused_backbone_regressor_kernel,
        out_shape=jax.ShapeDtypeStruct((n, STATE_DIM), jnp.float32),
        grid=(1,),
        in_specs=[_full_spec(a.shape) for a in ins],
        out_specs=_full_spec((n, STATE_DIM)),
    )(*ins)


# ---------------------------- Pallas kernel B: SMPL-like head ----------------------------
def _smpl_head_kernel(state_ref, posefeat_ref, vtemp_ref, shdirs_ref, pdirs_ref,
                      jreg_ref, verts_ref, joints_ref):
    # verts_flat = v_template + betas @ shapedirs + posefeat @ posedirs
    # (shapedirs is pre-embedded into STATE_DIM rows so the full state slab can be used)
    verts = (vtemp_ref[...]
             + jnp.dot(state_ref[...], shdirs_ref[...], preferred_element_type=jnp.float32)
             + jnp.dot(posefeat_ref[...], pdirs_ref[...], preferred_element_type=jnp.float32))
    verts_ref[...] = verts
    # joint regression while verts are still in VMEM: block-diagonal J-regressor matmul
    joints_ref[...] = jnp.dot(verts, jreg_ref[...], preferred_element_type=jnp.float32)


def smpl_head(state, posefeat_pad, jreg_blk, p):
    n = state.shape[0]
    ins = [state, posefeat_pad, p["v_template"], p["shapedirs_state"],
           p["posedirs_pad"], jreg_blk]
    out_shapes = (jax.ShapeDtypeStruct((n, N_VERTS * 3), jnp.float32),
                  jax.ShapeDtypeStruct((n, JOINT_PAD), jnp.float32))
    out_specs = (_full_spec((n, N_VERTS * 3)), _full_spec((n, JOINT_PAD)))
    return pl.pallas_call(
        _smpl_head_kernel,
        out_shape=out_shapes,
        grid=(1,),
        in_specs=[_full_spec(a.shape) for a in ins],
        out_specs=out_specs,
    )(*ins)


# ---------------------------- plain-JAX glue (tiny per-joint math) ----------------------------
def rot6d_to_rotmat(x):
    # x: (n, 144) -> (n*24, 3, 3), same math as SPIN's rot6d_to_rotmat
    x = x.reshape(-1, 3, 2)
    a1, a2 = x[:, :, 0], x[:, :, 1]
    b1 = a1 / jnp.maximum(jnp.linalg.norm(a1, axis=-1, keepdims=True), 1e-8)
    dot = jnp.sum(b1 * a2, axis=-1, keepdims=True)
    b2u = a2 - dot * b1
    b2 = b2u / jnp.maximum(jnp.linalg.norm(b2u, axis=-1, keepdims=True), 1e-8)
    b3 = jnp.cross(b1, b2)
    return jnp.stack([b1, b2, b3], axis=-1)


def rotmat_to_axis_angle(R):
    # R: (M, 3, 3) -> (M, 3)
    trace = R[:, 0, 0] + R[:, 1, 1] + R[:, 2, 2]
    cos = jnp.clip((trace - 1.0) * 0.5, -1.0 + 1e-6, 1.0 - 1e-6)
    angle = jnp.arccos(cos)
    axis = jnp.stack([R[:, 2, 1] - R[:, 1, 2],
                      R[:, 0, 2] - R[:, 2, 0],
                      R[:, 1, 0] - R[:, 0, 1]], axis=-1)
    denom = jnp.maximum(2.0 * jnp.sin(angle), 1e-6)[:, None]
    return axis / denom * angle[:, None]


def projection(kp_3d, cam, focal=5000.0, img_size=224.0):
    # VIBE-style perspective projection with weak-perspective camera (s, tx, ty).
    s, tx, ty = cam[:, 0], cam[:, 1], cam[:, 2]
    tz = 2.0 * focal / (img_size * s + 1e-9)
    t = jnp.stack([tx, ty, tz], axis=-1)[:, None, :]
    pts = kp_3d + t
    proj = focal * pts[:, :, :2] / pts[:, :, 2:3]
    return proj / (img_size / 2.0)


# ---------------------------- parameters (synthetic, packed once at init) ----------------------------
def init_params(key):
    ks = jax.random.split(key, 12)
    s = 0.02
    din = FEAT_DIM + NPOSE + NBETA + NCAM          # 285

    conv_w   = s * jax.random.normal(ks[0], (C_IN * 9, C_MID), jnp.float32)
    conv_b   = jnp.zeros((C_MID,), jnp.float32)
    featfc_w = s * jax.random.normal(ks[1], (C_MID, FEAT_DIM), jnp.float32)
    featfc_b = jnp.zeros((FEAT_DIM,), jnp.float32)
    fc1_w    = s * jax.random.normal(ks[2], (din, HIDDEN), jnp.float32)
    fc1_b    = jnp.zeros((HIDDEN,), jnp.float32)
    fc2_w    = s * jax.random.normal(ks[3], (HIDDEN, HIDDEN), jnp.float32)
    fc2_b    = jnp.zeros((HIDDEN,), jnp.float32)
    decpose_w  = s * jax.random.normal(ks[4], (HIDDEN, NPOSE), jnp.float32)
    decshape_w = s * jax.random.normal(ks[5], (HIDDEN, NBETA), jnp.float32)
    deccam_w   = s * jax.random.normal(ks[6], (HIDDEN, NCAM), jnp.float32)
    decpose_b, decshape_b, deccam_b = (jnp.zeros((NPOSE,), jnp.float32),
                                       jnp.zeros((NBETA,), jnp.float32),
                                       jnp.zeros((NCAM,), jnp.float32))
    v_template = s * jax.random.normal(ks[7], (1, N_VERTS * 3), jnp.float32)
    shapedirs  = s * jax.random.normal(ks[8], (NBETA, N_VERTS * 3), jnp.float32)
    posedirs   = s * jax.random.normal(ks[9], (POSEFEAT, N_VERTS * 3), jnp.float32)
    jr = jnp.abs(jax.random.normal(ks[10], (N_JOINTS, N_VERTS), jnp.float32))
    J_regressor = jr / jnp.sum(jr, axis=1, keepdims=True)

    # mean-parameter buffers (6D identity rotation per joint, zero betas, cam scale 0.9)
    init_pose  = jnp.tile(jnp.array([1., 0., 0., 1., 0., 0.], jnp.float32), (N_JOINTS,))
    init_shape = jnp.zeros((NBETA,), jnp.float32)
    init_cam   = jnp.array([0.9, 0.0, 0.0], jnp.float32)

    # ---- pack into fused / lane-dense forms (trace-time, done once) ----
    nstate = NPOSE + NBETA + NCAM                                     # 157
    w1_feat  = fc1_w[:FEAT_DIM]                                       # (128, HIDDEN)
    w1_state = jnp.pad(fc1_w[FEAT_DIM:], ((0, STATE_DIM - nstate), (0, 0)))  # (256, HIDDEN)
    wdec = jnp.pad(jnp.concatenate([decpose_w, decshape_w, deccam_w], axis=1),
                   ((0, 0), (0, STATE_DIM - nstate)))                 # (HIDDEN, 256)
    bdec = jnp.pad(jnp.concatenate([decpose_b, decshape_b, deccam_b]),
                   (0, STATE_DIM - nstate)).reshape(1, STATE_DIM)
    init_state = jnp.pad(jnp.concatenate([init_pose, init_shape, init_cam]),
                         (0, STATE_DIM - nstate)).reshape(1, STATE_DIM)
    # embed shapedirs at the "shape" rows of the state slab so the kernel can consume
    # the whole state without a 10-wide slice going through HBM
    shapedirs_state = jnp.pad(shapedirs, ((NPOSE, STATE_DIM - NPOSE - NBETA), (0, 0)))
    posedirs_pad = jnp.pad(posedirs, ((0, POSEFEAT_PAD - POSEFEAT), (0, 0)))

    return {
        "conv_w": conv_w, "conv_b": conv_b.reshape(1, C_MID),
        "featfc_w": featfc_w, "featfc_b": featfc_b.reshape(1, FEAT_DIM),
        "w1_feat": w1_feat, "w1_state": w1_state, "b1": fc1_b.reshape(1, HIDDEN),
        "w2": fc2_w, "b2": fc2_b.reshape(1, HIDDEN),
        "wdec": wdec, "bdec": bdec,
        "init_state": init_state,
        "v_template": v_template,
        "shapedirs_state": shapedirs_state,
        "posedirs_pad": posedirs_pad,
        "J_regressor": J_regressor,
    }


# ---------------------------- forward (mirrors VIBE_Demo.forward) ----------------------------
def vibe_demo_forward(params, x, J_regressor=None):
    n, nc, h, w = x.shape
    hw = h * w

    # ---- HMR stand-in: conv3x3 + ReLU + global average pool + FC
    # im2col stays as cheap JAX glue; the matmuls + pooling + IEF all run in ONE kernel.
    # TODO(synk): full ResNet-50 HMR backbone replaced by this scaled-down conv+pool+FC stand-in.
    # TODO(synk): im2col could be built in-kernel with shifted loads; left as glue on this tiny image.
    xp = jnp.pad(x, ((0, 0), (0, 0), (1, 1), (1, 1)))
    cols = [xp[:, :, dy:dy + h, dx:dx + w] for dy in range(3) for dx in range(3)]
    patches = jnp.concatenate(cols, axis=1)                 # (n, 9*C, h, w)
    patches = patches.transpose(0, 2, 3, 1).reshape(n * hw, nc * 9)
    pool_mat = jnp.repeat(jnp.eye(n, dtype=jnp.float32), hw, axis=1) / float(hw)  # (n, n*HW)

    # ---- fused backbone + SPIN regressor (3 IEF iterations) -> lane-dense state slab
    state = fused_backbone_regressor(patches, pool_mat, params)       # (n, 256)
    pred_pose  = state[:, :NPOSE]
    pred_shape = state[:, NPOSE:NPOSE + NBETA]
    pred_cam   = state[:, NPOSE + NBETA:NPOSE + NBETA + NCAM]

    pred_rotmat = rot6d_to_rotmat(pred_pose).reshape(n, N_JOINTS, 3, 3)

    # ---- SMPL-like head: blend shapes + joint regression, one fused kernel
    # TODO(synk): full SMPL linear-blend-skinning replaced by template + shape/pose blendshapes.
    posefeat = (pred_rotmat[:, 1:] - jnp.eye(3, dtype=jnp.float32)).reshape(n, POSEFEAT)
    posefeat = jnp.pad(posefeat, ((0, 0), (0, POSEFEAT_PAD - POSEFEAT)))

    jreg = params["J_regressor"] if J_regressor is None else J_regressor
    # block-diagonal embedding of the (J, V) regressor so joints come out as a single
    # lane-dense (n, 128) matmul inside the kernel: blk[v*3+c, j*3+c'] = jreg[j,v] * (c==c')
    jreg_blk = jnp.einsum("jv,ck->vcjk", jreg, jnp.eye(3, dtype=jnp.float32))
    jreg_blk = jreg_blk.reshape(N_VERTS * 3, N_JOINTS * 3)
    jreg_blk = jnp.pad(jreg_blk, ((0, 0), (0, JOINT_PAD - N_JOINTS * 3)))

    verts_flat, joints_pad = smpl_head(state, posefeat, jreg_blk, params)
    verts = verts_flat.reshape(n, N_VERTS, 3)
    kp_3d = joints_pad[:, :N_JOINTS * 3].reshape(n, N_JOINTS, 3)
    kp_2d = projection(kp_3d, pred_cam)                      # (n, J, 2)

    pose_aa = rotmat_to_axis_angle(pred_rotmat.reshape(-1, 3, 3)).reshape(n, N_JOINTS * 3)
    theta = jnp.concatenate([pred_cam, pose_aa, pred_shape], axis=-1)   # (n, 85)

    smpl_output = [{
        "theta": theta,
        "verts": verts,
        "kp_2d": kp_2d,
        "kp_3d": kp_3d,
        "rotmat": pred_rotmat,
    }]
    for s in smpl_output:
        s["theta"] = s["theta"].reshape(n, -1)
        s["verts"] = s["verts"].reshape(n, -1, 3)
        s["kp_2d"] = s["kp_2d"].reshape(n, -1, 2)
        s["kp_3d"] = s["kp_3d"].reshape(n, -1, 3)
        s["rotmat"] = s["rotmat"].reshape(n, -1, 3, 3)
    return smpl_output


# ---------------------------- main ----------------------------
if __name__ == "__main__":
    key = jax.random.PRNGKey(0)
    k_param, k_data = jax.random.split(key)
    params = init_params(k_param)
    x = jax.random.normal(k_data, (N_BATCH, C_IN, IMG_H, IMG_W), jnp.float32)  # NCHW

    fwd = jax.jit(lambda p, xx: vibe_demo_forward(p, xx, J_regressor=None))
    out = fwd(params, x)
    out = jax.block_until_ready(out)

    s = out[0]
    assert s["theta"].shape == (N_BATCH, 3 + N_JOINTS * 3 + NBETA)
    assert s["verts"].shape == (N_BATCH, N_VERTS, 3)
    assert s["kp_2d"].shape == (N_BATCH, N_JOINTS, 2)
    assert s["kp_3d"].shape == (N_BATCH, N_JOINTS, 3)
    assert s["rotmat"].shape == (N_BATCH, N_JOINTS, 3, 3)
    print("KERNEL_OK")
</pallas_src>

<mosaic_0001>
module attributes {stable_mosaic.version = 11 : i64} {
  func.func @_fused_backbone_regressor_kernel(%arg0: i32, %arg1: memref<512x36xf32, #tpu.memory_space<vmem>>, %arg2: memref<2x512xf32, #tpu.memory_space<vmem>>, %arg3: memref<36x32xf32, #tpu.memory_space<vmem>>, %arg4: memref<1x32xf32, #tpu.memory_space<vmem>>, %arg5: memref<32x128xf32, #tpu.memory_space<vmem>>, %arg6: memref<1x128xf32, #tpu.memory_space<vmem>>, %arg7: memref<1x256xf32, #tpu.memory_space<vmem>>, %arg8: memref<128x128xf32, #tpu.memory_space<vmem>>, %arg9: memref<256x128xf32, #tpu.memory_space<vmem>>, %arg10: memref<1x128xf32, #tpu.memory_space<vmem>>, %arg11: memref<128x128xf32, #tpu.memory_space<vmem>>, %arg12: memref<1x128xf32, #tpu.memory_space<vmem>>, %arg13: memref<128x256xf32, #tpu.memory_space<vmem>>, %arg14: memref<1x256xf32, #tpu.memory_space<vmem>>, %arg15: memref<2x256xf32, #tpu.memory_space<vmem>>) attributes {dimension_semantics = [#tpu.dimension_semantics<arbitrary>], iteration_bounds = array<i64: 1>, scalar_prefetch = 0 : i64, scratch_operands = 0 : i64, tpu.core_type = #tpu.core_type<tc>, window_params = [{pipeline_mode = #tpu.pipeline_mode<synchronous>, transform_indices = @transform_0, window_bounds = array<i64: 512, 36>}, {pipeline_mode = #tpu.pipeline_mode<synchronous>, transform_indices = @transform_1, window_bounds = array<i64: 2, 512>}, {pipeline_mode = #tpu.pipeline_mode<synchronous>, transform_indices = @transform_2, window_bounds = array<i64: 36, 32>}, {pipeline_mode = #tpu.pipeline_mode<synchronous>, transform_indices = @transform_3, window_bounds = array<i64: 1, 32>}, {pipeline_mode = #tpu.pipeline_mode<synchronous>, transform_indices = @transform_4, window_bounds = array<i64: 32, 128>}, {pipeline_mode = #tpu.pipeline_mode<synchronous>, transform_indices = @transform_5, window_bounds = array<i64: 1, 128>}, {pipeline_mode = #tpu.pipeline_mode<synchronous>, transform_indices = @transform_6, window_bounds = array<i64: 1, 256>}, {pipeline_mode = #tpu.pipeline_mode<synchronous>, transform_indices = @transform_7, window_bounds = array<i64: 128, 128>}, {pipeline_mode = #tpu.pipeline_mode<synchronous>, transform_indices = @transform_8, window_bounds = array<i64: 256, 128>}, {pipeline_mode = #tpu.pipeline_mode<synchronous>, transform_indices = @transform_9, window_bounds = array<i64: 1, 128>}, {pipeline_mode = #tpu.pipeline_mode<synchronous>, transform_indices = @transform_10, window_bounds = array<i64: 128, 128>}, {pipeline_mode = #tpu.pipeline_mode<synchronous>, transform_indices = @transform_11, window_bounds = array<i64: 1, 128>}, {pipeline_mode = #tpu.pipeline_mode<synchronous>, transform_indices = @transform_12, window_bounds = array<i64: 128, 256>}, {pipeline_mode = #tpu.pipeline_mode<synchronous>, transform_indices = @transform_13, window_bounds = array<i64: 1, 256>}, {pipeline_mode = #tpu.pipeline_mode<synchronous>, transform_indices = @transform_14, window_bounds = array<i64: 2, 256>}]} {
    %c0 = arith.constant 0 : index
    %c0_0 = arith.constant 0 : index
    %0 = vector.load %arg1[%c0, %c0_0] : memref<512x36xf32, #tpu.memory_space<vmem>>, vector<512x36xf32>
    %c0_1 = arith.constant 0 : index
    %c0_2 = arith.constant 0 : index
    %1 = vector.load %arg3[%c0_1, %c0_2] : memref<36x32xf32, #tpu.memory_space<vmem>>, vector<36x32xf32>
    %cst = arith.constant dense<0.000000e+00> : vector<512x32xf32>
    %2 = tpu.matmul %0, %1, %cst {dimension_numbers = #tpu.dot_dimension_numbers<[1], [0], [0], [1], [0, 0, 1, 1], [], []>} : vector<512x36xf32>, vector<36x32xf32>, vector<512x32xf32> -> vector<512x32xf32>
    %c0_3 = arith.constant 0 : index
    %c0_4 = arith.constant 0 : index
    %3 = vector.load %arg4[%c0_3, %c0_4] : memref<1x32xf32, #tpu.memory_space<vmem>>, vector<1x32xf32>
    %4 = vector.broadcast %3 : vector<1x32xf32> to vector<512x32xf32>
    %5 = arith.addf %2, %4 : vector<512x32xf32>
    %cst_5 = arith.constant 0.000000e+00 : f32
    %6 = vector.broadcast %cst_5 : f32 to vector<512x32xf32>
    %7 = arith.maximumf %5, %6 : vector<512x32xf32>
    %c0_6 = arith.constant 0 : index
    %c0_7 = arith.constant 0 : index
    %8 = vector.load %arg2[%c0_6, %c0_7] : memref<2x512xf32, #tpu.memory_space<vmem>>, vector<2x512xf32>
    %cst_8 = arith.constant dense<0.000000e+00> : vector<2x32xf32>
    %9 = tpu.matmul %8, %7, %cst_8 {dimension_numbers = #tpu.dot_dimension_numbers<[1], [0], [0], [1], [0, 0, 1, 1], [], []>} : vector<2x512xf32>, vector<512x32xf32>, vector<2x32xf32> -> vector<2x32xf32>
    %c0_9 = arith.constant 0 : index
    %c0_10 = arith.constant 0 : index
    %10 = vector.load %arg5[%c0_9, %c0_10] : memref<32x128xf32, #tpu.memory_space<vmem>>, vector<32x128xf32>
    %cst_11 = arith.constant dense<0.000000e+00> : vector<2x128xf32>
    %11 = tpu.matmul %9, %10, %cst_11 {dimension_numbers = #tpu.dot_dimension_numbers<[1], [0], [0], [1], [0, 0, 1, 1], [], []>} : vector<2x32xf32>, vector<32x128xf32>, vector<2x128xf32> -> vector<2x128xf32>
    %c0_12 = arith.constant 0 : index
    %c0_13 = arith.constant 0 : index
    %12 = vector.load %arg6[%c0_12, %c0_13] : memref<1x128xf32, #tpu.memory_space<vmem>>, vector<1x128xf32>
    %13 = vector.broadcast %12 : vector<1x128xf32> to vector<2x128xf32>
    %14 = arith.addf %11, %13 : vector<2x128xf32>
    %c0_14 = arith.constant 0 : index
    %c0_15 = arith.constant 0 : index
    %15 = vector.load %arg7[%c0_14, %c0_15] : memref<1x256xf32, #tpu.memory_space<vmem>>, vector<1x256xf32>
    %16 = vector.shape_cast %15 : vector<1x256xf32> to vector<1x256xf32>
    %17 = vector.broadcast %16 : vector<1x256xf32> to vector<2x256xf32>
    %c0_16 = arith.constant 0 : index
    %c0_17 = arith.constant 0 : index
    %18 = vector.load %arg8[%c0_16, %c0_17] : memref<128x128xf32, #tpu.memory_space<vmem>>, vector<128x128xf32>
    %cst_18 = arith.constant dense<0.000000e+00> : vector<2x128xf32>
    %19 = tpu.matmul %14, %18, %cst_18 {dimension_numbers = #tpu.dot_dimension_numbers<[1], [0], [0], [1], [0, 0, 1, 1], [], []>} : vector<2x128xf32>, vector<128x128xf32>, vector<2x128xf32> -> vector<2x128xf32>
    %c0_19 = arith.constant 0 : index
    %c0_20 = arith.constant 0 : index
    %20 = vector.load %arg10[%c0_19, %c0_20] : memref<1x128xf32, #tpu.memory_space<vmem>>, vector<1x128xf32>
    %21 = vector.broadcast %20 : vector<1x128xf32> to vector<2x128xf32>
    %22 = arith.addf %19, %21 : vector<2x128xf32>
    %c0_21 = arith.constant 0 : index
    %c0_22 = arith.constant 0 : index
    %23 = vector.load %arg9[%c0_21, %c0_22] : memref<256x128xf32, #tpu.memory_space<vmem>>, vector<256x128xf32>
    %cst_23 = arith.constant dense<0.000000e+00> : vector<2x128xf32>
    %24 = tpu.matmul %17, %23, %cst_23 {dimension_numbers = #tpu.dot_dimension_numbers<[1], [0], [0], [1], [0, 0, 1, 1], [], []>} : vector<2x256xf32>, vector<256x128xf32>, vector<2x128xf32> -> vector<2x128xf32>
    %25 = arith.addf %22, %24 : vector<2x128xf32>
    %c0_24 = arith.constant 0 : index
    %c0_25 = arith.constant 0 : index
    %26 = vector.load %arg11[%c0_24, %c0_25] : memref<128x128xf32, #tpu.memory_space<vmem>>, vector<128x128xf32>
    %cst_26 = arith.constant dense<0.000000e+00> : vector<2x128xf32>
    %27 = tpu.matmul %25, %26, %cst_26 {dimension_numbers = #tpu.dot_dimension_numbers<[1], [0], [0], [1], [0, 0, 1, 1], [], []>} : vector<2x128xf32>, vector<128x128xf32>, vector<2x128xf32> -> vector<2x128xf32>
    %c0_27 = arith.constant 0 : index
    %c0_28 = arith.constant 0 : index
    %28 = vector.load %arg12[%c0_27, %c0_28] : memref<1x128xf32, #tpu.memory_space<vmem>>, vector<1x128xf32>
    %29 = vector.broadcast %28 : vector<1x128xf32> to vector<2x128xf32>
    %30 = arith.addf %27, %29 : vector<2x128xf32>
    %c0_29 = arith.constant 0 : index
    %c0_30 = arith.constant 0 : index
    %31 = vector.load %arg13[%c0_29, %c0_30] : memref<128x256xf32, #tpu.memory_space<vmem>>, vector<128x256xf32>
    %cst_31 = arith.constant dense<0.000000e+00> : vector<2x256xf32>
    %32 = tpu.matmul %30, %31, %cst_31 {dimension_numbers = #tpu.dot_dimension_numbers<[1], [0], [0], [1], [0, 0, 1, 1], [], []>} : vector<2x128xf32>, vector<128x256xf32>, vector<2x256xf32> -> vector<2x256xf32>
    %33 = arith.addf %17, %32 : vector<2x256xf32>
    %c0_32 = arith.constant 0 : index
    %c0_33 = arith.constant 0 : index
    %34 = vector.load %arg14[%c0_32, %c0_33] : memref<1x256xf32, #tpu.memory_space<vmem>>, vector<1x256xf32>
    %35 = vector.broadcast %34 : vector<1x256xf32> to vector<2x256xf32>
    %36 = arith.addf %33, %35 : vector<2x256xf32>
    %c0_34 = arith.constant 0 : index
    %c0_35 = arith.constant 0 : index
    %37 = vector.load %arg9[%c0_34, %c0_35] : memref<256x128xf32, #tpu.memory_space<vmem>>, vector<256x128xf32>
    %cst_36 = arith.constant dense<0.000000e+00> : vector<2x128xf32>
    %38 = tpu.matmul %36, %37, %cst_36 {dimension_numbers = #tpu.dot_dimension_numbers<[1], [0], [0], [1], [0, 0, 1, 1], [], []>} : vector<2x256xf32>, vector<256x128xf32>, vector<2x128xf32> -> vector<2x128xf32>
    %39 = arith.addf %22, %38 : vector<2x128xf32>
    %c0_37 = arith.constant 0 : index
    %c0_38 = arith.constant 0 : index
    %40 = vector.load %arg11[%c0_37, %c0_38] : memref<128x128xf32, #tpu.memory_space<vmem>>, vector<128x128xf32>
    %cst_39 = arith.constant dense<0.000000e+00> : vector<2x128xf32>
    %41 = tpu.matmul %39, %40, %cst_39 {dimension_numbers = #tpu.dot_dimension_numbers<[1], [0], [0], [1], [0, 0, 1, 1], [], []>} : vector<2x128xf32>, vector<128x128xf32>, vector<2x128xf32> -> vector<2x128xf32>
    %c0_40 = arith.constant 0 : index
    %c0_41 = arith.constant 0 : index
    %42 = vector.load %arg12[%c0_40, %c0_41] : memref<1x128xf32, #tpu.memory_space<vmem>>, vector<1x128xf32>
    %43 = vector.broadcast %42 : vector<1x128xf32> to vector<2x128xf32>
    %44 = arith.addf %41, %43 : vector<2x128xf32>
    %c0_42 = arith.constant 0 : index
    %c0_43 = arith.constant 0 : index
    %45 = vector.load %arg13[%c0_42, %c0_43] : memref<128x256xf32, #tpu.memory_space<vmem>>, vector<128x256xf32>
    %cst_44 = arith.constant dense<0.000000e+00> : vector<2x256xf32>
    %46 = tpu.matmul %44, %45, %cst_44 {dimension_numbers = #tpu.dot_dimension_numbers<[1], [0], [0], [1], [0, 0, 1, 1], [], []>} : vector<2x128xf32>, vector<128x256xf32>, vector<2x256xf32> -> vector<2x256xf32>
    %47 = arith.addf %36, %46 : vector<2x256xf32>
    %c0_45 = arith.constant 0 : index
    %c0_46 = arith.constant 0 : index
    %48 = vector.load %arg14[%c0_45, %c0_46] : memref<1x256xf32, #tpu.memory_space<vmem>>, vector<1x256xf32>
    %49 = vector.broadcast %48 : vector<1x256xf32> to vector<2x256xf32>
    %50 = arith.addf %47, %49 : vector<2x256xf32>
    %c0_47 = arith.constant 0 : index
    %c0_48 = arith.constant 0 : index
    %51 = vector.load %arg9[%c0_47, %c0_48] : memref<256x128xf32, #tpu.memory_space<vmem>>, vector<256x128xf32>
    %cst_49 = arith.constant dense<0.000000e+00> : vector<2x128xf32>
    %52 = tpu.matmul %50, %51, %cst_49 {dimension_numbers = #tpu.dot_dimension_numbers<[1], [0], [0], [1], [0, 0, 1, 1], [], []>} : vector<2x256xf32>, vector<256x128xf32>, vector<2x128xf32> -> vector<2x128xf32>
    %53 = arith.addf %22, %52 : vector<2x128xf32>
    %c0_50 = arith.constant 0 : index
    %c0_51 = arith.constant 0 : index
    %54 = vector.load %arg11[%c0_50, %c0_51] : memref<128x128xf32, #tpu.memory_space<vmem>>, vector<128x128xf32>
    %cst_52 = arith.constant dense<0.000000e+00> : vector<2x128xf32>
    %55 = tpu.matmul %53, %54, %cst_52 {dimension_numbers = #tpu.dot_dimension_numbers<[1], [0], [0], [1], [0, 0, 1, 1], [], []>} : vector<2x128xf32>, vector<128x128xf32>, vector<2x128xf32> -> vector<2x128xf32>
    %c0_53 = arith.constant 0 : index
    %c0_54 = arith.constant 0 : index
    %56 = vector.load %arg12[%c0_53, %c0_54] : memref<1x128xf32, #tpu.memory_space<vmem>>, vector<1x128xf32>
    %57 = vector.broadcast %56 : vector<1x128xf32> to vector<2x128xf32>
    %58 = arith.addf %55, %57 : vector<2x128xf32>
    %c0_55 = arith.constant 0 : index
    %c0_56 = arith.constant 0 : index
    %59 = vector.load %arg13[%c0_55, %c0_56] : memref<128x256xf32, #tpu.memory_space<vmem>>, vector<128x256xf32>
    %cst_57 = arith.constant dense<0.000000e+00> : vector<2x256xf32>
    %60 = tpu.matmul %58, %59, %cst_57 {dimension_numbers = #tpu.dot_dimension_numbers<[1], [0], [0], [1], [0, 0, 1, 1], [], []>} : vector<2x128xf32>, vector<128x256xf32>, vector<2x256xf32> -> vector<2x256xf32>
    %61 = arith.addf %50, %60 : vector<2x256xf32>
    %c0_58 = arith.constant 0 : index
    %c0_59 = arith.constant 0 : index
    %62 = vector.load %arg14[%c0_58, %c0_59] : memref<1x256xf32, #tpu.memory_space<vmem>>, vector<1x256xf32>
    %63 = vector.broadcast %62 : vector<1x256xf32> to vector<2x256xf32>
    %64 = arith.addf %61, %63 : vector<2x256xf32>
    %c0_60 = arith.constant 0 : index
    %c0_61 = arith.constant 0 : index
    %65 = vector.load %arg15[%c0_60, %c0_61] : memref<2x256xf32, #tpu.memory_space<vmem>>, vector<2x256xf32>
    tpu.vector_store %arg15[%c0_60, %c0_61], %64 {strides = array<i32>} : memref<2x256xf32, #tpu.memory_space<vmem>>, vector<2x256xf32>,
    return
  }
  func.func @transform_0(%arg0: i32) -> (i32, i32) {
    %c0_i32 = arith.constant 0 : i32
    %c0_i32_0 = arith.constant 0 : i32
    %c0_i32_1 = arith.constant 0 : i32
    return %c0_i32, %c0_i32_0 : i32, i32
  }
  func.func @transform_1(%arg0: i32) -> (i32, i32) {
    %c0_i32 = arith.constant 0 : i32
    %c0_i32_0 = arith.constant 0 : i32
    %c0_i32_1 = arith.constant 0 : i32
    return %c0_i32, %c0_i32_0 : i32, i32
  }
  func.func @transform_2(%arg0: i32) -> (i32, i32) {
    %c0_i32 = arith.constant 0 : i32
    %c0_i32_0 = arith.constant 0 : i32
    %c0_i32_1 = arith.constant 0 : i32
    return %c0_i32, %c0_i32_0 : i32, i32
  }
  func.func @transform_3(%arg0: i32) -> (i32, i32) {
    %c0_i32 = arith.constant 0 : i32
    %c0_i32_0 = arith.constant 0 : i32
    %c0_i32_1 = arith.constant 0 : i32
    return %c0_i32, %c0_i32_0 : i32, i32
  }
  func.func @transform_4(%arg0: i32) -> (i32, i32) {
    %c0_i32 = arith.constant 0 : i32
    %c0_i32_0 = arith.constant 0 : i32
    %c0_i32_1 = arith.constant 0 : i32
    return %c0_i32, %c0_i32_0 : i32, i32
  }
  func.func @transform_5(%arg0: i32) -> (i32, i32) {
    %c0_i32 = arith.constant 0 : i32
    %c0_i32_0 = arith.constant 0 : i32
    %c0_i32_1 = arith.constant 0 : i32
    return %c0_i32, %c0_i32_0 : i32, i32
  }
  func.func @transform_6(%arg0: i32) -> (i32, i32) {
    %c0_i32 = arith.constant 0 : i32
    %c0_i32_0 = arith.constant 0 : i32
    %c0_i32_1 = arith.constant 0 : i32
    return %c0_i32, %c0_i32_0 : i32, i32
  }
  func.func @transform_7(%arg0: i32) -> (i32, i32) {
    %c0_i32 = arith.constant 0 : i32
    %c0_i32_0 = arith.constant 0 : i32
    %c0_i32_1 = arith.constant 0 : i32
    return %c0_i32, %c0_i32_0 : i32, i32
  }
  func.func @transform_8(%arg0: i32) -> (i32, i32) {
    %c0_i32 = arith.constant 0 : i32
    %c0_i32_0 = arith.constant 0 : i32
    %c0_i32_1 = arith.constant 0 : i32
    return %c0_i32, %c0_i32_0 : i32, i32
  }
  func.func @transform_9(%arg0: i32) -> (i32, i32) {
    %c0_i32 = arith.constant 0 : i32
    %c0_i32_0 = arith.constant 0 : i32
    %c0_i32_1 = arith.constant 0 : i32
    return %c0_i32, %c0_i32_0 : i32, i32
  }
  func.func @transform_10(%arg0: i32) -> (i32, i32) {
    %c0_i32 = arith.constant 0 : i32
    %c0_i32_0 = arith.constant 0 : i32
    %c0_i32_1 = arith.constant 0 : i32
    return %c0_i32, %c0_i32_0 : i32, i32
  }
  func.func @transform_11(%arg0: i32) -> (i32, i32) {
    %c0_i32 = arith.constant 0 : i32
    %c0_i32_0 = arith.constant 0 : i32
    %c0_i32_1 = arith.constant 0 : i32
    return %c0_i32, %c0_i32_0 : i32, i32
  }
  func.func @transform_12(%arg0: i32) -> (i32, i32) {
    %c0_i32 = arith.constant 0 : i32
    %c0_i32_0 = arith.constant 0 : i32
    %c0_i32_1 = arith.constant 0 : i32
    return %c0_i32, %c0_i32_0 : i32, i32
  }
  func.func @transform_13(%arg0: i32) -> (i32, i32) {
    %c0_i32 = arith.constant 0 : i32
    %c0_i32_0 = arith.constant 0 : i32
    %c0_i32_1 = arith.constant 0 : i32
    return %c0_i32, %c0_i32_0 : i32, i32
  }
  func.func @transform_14(%arg0: i32) -> (i32, i32) {
    %c0_i32 = arith.constant 0 : i32
    %c0_i32_0 = arith.constant 0 : i32
    %c0_i32_1 = arith.constant 0 : i32
    return %c0_i32, %c0_i32_0 : i32, i32
  }
}

module attributes {stable_mosaic.version = 11 : i64} {
  func.func @_smpl_head_kernel(%arg0: i32, %arg1: memref<2x256xf32, #tpu.memory_space<vmem>>, %arg2: memref<2x256xf32, #tpu.memory_space<vmem>>, %arg3: memref<1x384xf32, #tpu.memory_space<vmem>>, %arg4: memref<256x384xf32, #tpu.memory_space<vmem>>, %arg5: memref<256x384xf32, #tpu.memory_space<vmem>>, %arg6: memref<384x128xf32, #tpu.memory_space<vmem>>, %arg7: memref<2x384xf32, #tpu.memory_space<vmem>>, %arg8: memref<2x128xf32, #tpu.memory_space<vmem>>) attributes {dimension_semantics = [#tpu.dimension_semantics<arbitrary>], iteration_bounds = array<i64: 1>, scalar_prefetch = 0 : i64, scratch_operands = 0 : i64, tpu.core_type = #tpu.core_type<tc>, window_params = [{pipeline_mode = #tpu.pipeline_mode<synchronous>, transform_indices = @transform_0, window_bounds = array<i64: 2, 256>}, {pipeline_mode = #tpu.pipeline_mode<synchronous>, transform_indices = @transform_1, window_bounds = array<i64: 2, 256>}, {pipeline_mode = #tpu.pipeline_mode<synchronous>, transform_indices = @transform_2, window_bounds = array<i64: 1, 384>}, {pipeline_mode = #tpu.pipeline_mode<synchronous>, transform_indices = @transform_3, window_bounds = array<i64: 256, 384>}, {pipeline_mode = #tpu.pipeline_mode<synchronous>, transform_indices = @transform_4, window_bounds = array<i64: 256, 384>}, {pipeline_mode = #tpu.pipeline_mode<synchronous>, transform_indices = @transform_5, window_bounds = array<i64: 384, 128>}, {pipeline_mode = #tpu.pipeline_mode<synchronous>, transform_indices = @transform_6, window_bounds = array<i64: 2, 384>}, {pipeline_mode = #tpu.pipeline_mode<synchronous>, transform_indices = @transform_7, window_bounds = array<i64: 2, 128>}]} {
    %c0 = arith.constant 0 : index
    %c0_0 = arith.constant 0 : index
    %0 = vector.load %arg3[%c0, %c0_0] : memref<1x384xf32, #tpu.memory_space<vmem>>, vector<1x384xf32>
    %c0_1 = arith.constant 0 : index
    %c0_2 = arith.constant 0 : index
    %1 = vector.load %arg1[%c0_1, %c0_2] : memref<2x256xf32, #tpu.memory_space<vmem>>, vector<2x256xf32>
    %c0_3 = arith.constant 0 : index
    %c0_4 = arith.constant 0 : index
    %2 = vector.load %arg4[%c0_3, %c0_4] : memref<256x384xf32, #tpu.memory_space<vmem>>, vector<256x384xf32>
    %cst = arith.constant dense<0.000000e+00> : vector<2x384xf32>
    %3 = tpu.matmul %1, %2, %cst {dimension_numbers = #tpu.dot_dimension_numbers<[1], [0], [0], [1], [0, 0, 1, 1], [], []>} : vector<2x256xf32>, vector<256x384xf32>, vector<2x384xf32> -> vector<2x384xf32>
    %4 = vector.broadcast %0 : vector<1x384xf32> to vector<2x384xf32>
    %5 = arith.addf %4, %3 : vector<2x384xf32>
    %c0_5 = arith.constant 0 : index
    %c0_6 = arith.constant 0 : index
    %6 = vector.load %arg2[%c0_5, %c0_6] : memref<2x256xf32, #tpu.memory_space<vmem>>, vector<2x256xf32>
    %c0_7 = arith.constant 0 : index
    %c0_8 = arith.constant 0 : index
    %7 = vector.load %arg5[%c0_7, %c0_8] : memref<256x384xf32, #tpu.memory_space<vmem>>, vector<256x384xf32>
    %cst_9 = arith.constant dense<0.000000e+00> : vector<2x384xf32>
    %8 = tpu.matmul %6, %7, %cst_9 {dimension_numbers = #tpu.dot_dimension_numbers<[1], [0], [0], [1], [0, 0, 1, 1], [], []>} : vector<2x256xf32>, vector<256x384xf32>, vector<2x384xf32> -> vector<2x384xf32>
    %9 = arith.addf %5, %8 : vector<2x384xf32>
    %c0_10 = arith.constant 0 : index
    %c0_11 = arith.constant 0 : index
    %10 = vector.load %arg7[%c0_10, %c0_11] : memref<2x384xf32, #tpu.memory_space<vmem>>, vector<2x384xf32>
    tpu.vector_store %arg7[%c0_10, %c0_11], %9 {strides = array<i32>} : memref<2x384xf32, #tpu.memory_space<vmem>>, vector<2x384xf32>,
    %c0_12 = arith.constant 0 : index
    %c0_13 = arith.constant 0 : index
    %11 = vector.load %arg6[%c0_12, %c0_13] : memref<384x128xf32, #tpu.memory_space<vmem>>, vector<384x128xf32>
    %cst_14 = arith.constant dense<0.000000e+00> : vector<2x128xf32>
    %12 = tpu.matmul %9, %11, %cst_14 {dimension_numbers = #tpu.dot_dimension_numbers<[1], [0], [0], [1], [0, 0, 1, 1], [], []>} : vector<2x384xf32>, vector<384x128xf32>, vector<2x128xf32> -> vector<2x128xf32>
    %c0_15 = arith.constant 0 : index
    %c0_16 = arith.constant 0 : index
    %13 = vector.load %arg8[%c0_15, %c0_16] : memref<2x128xf32, #tpu.memory_space<vmem>>, vector<2x128xf32>
    tpu.vector_store %arg8[%c0_15, %c0_16], %12 {strides = array<i32>} : memref<2x128xf32, #tpu.memory_space<vmem>>, vector<2x128xf32>,
    return
  }
  func.func @transform_0(%arg0: i32) -> (i32, i32) {
    %c0_i32 = arith.constant 0 : i32
    %c0_i32_0 = arith.constant 0 : i32
    %c0_i32_1 = arith.constant 0 : i32
    return %c0_i32, %c0_i32_0 : i32, i32
  }
  func.func @transform_1(%arg0: i32) -> (i32, i32) {
    %c0_i32 = arith.constant 0 : i32
    %c0_i32_0 = arith.constant 0 : i32
    %c0_i32_1 = arith.constant 0 : i32
    return %c0_i32, %c0_i32_0 : i32, i32
  }
  func.func @transform_2(%arg0: i32) -> (i32, i32) {
    %c0_i32 = arith.constant 0 : i32
    %c0_i32_0 = arith.constant 0 : i32
    %c0_i32_1 = arith.constant 0 : i32
    return %c0_i32, %c0_i32_0 : i32, i32
  }
  func.func @transform_3(%arg0: i32) -> (i32, i32) {
    %c0_i32 = arith.constant 0 : i32
    %c0_i32_0 = arith.constant 0 : i32
    %c0_i32_1 = arith.constant 0 : i32
    return %c0_i32, %c0_i32_0 : i32, i32
  }
  func.func @transform_4(%arg0: i32) -> (i32, i32) {
    %c0_i32 = arith.constant 0 : i32
    %c0_i32_0 = arith.constant 0 : i32
    %c0_i32_1 = arith.constant 0 : i32
    return %c0_i32, %c0_i32_0 : i32, i32
  }
  func.func @transform_5(%arg0: i32) -> (i32, i32) {
    %c0_i32 = arith.constant 0 : i32
    %c0_i32_0 = arith.constant 0 : i32
    %c0_i32_1 = arith.constant 0 : i32
    return %c0_i32, %c0_i32_0 : i32, i32
  }
  func.func @transform_6(%arg0: i32) -> (i32, i32) {
    %c0_i32 = arith.constant 0 : i32
    %c0_i32_0 = arith.constant 0 : i32
    %c0_i32_1 = arith.constant 0 : i32
    return %c0_i32, %c0_i32_0 : i32, i32
  }
  func.func @transform_7(%arg0: i32) -> (i32, i32) {
    %c0_i32 = arith.constant 0 : i32
    %c0_i32_0 = arith.constant 0 : i32
    %c0_i32_1 = arith.constant 0 : i32
    return %c0_i32, %c0_i32_0 : i32, i32
  }
}

</mosaic_0001>

<bundles_post_ra>
// kernel: _lambda_.2
= control target key start
LH: loop header
LB: loop body
LE: loop exit
PB: predicated region body
PF: predicated region fallthrough
CT: control target
= control target key end

     0   :  { %vm123_vm0 = vcmask 293888   ;;  %vm316_vm1 = vcmask 1043456   ;;  %vm2903_vm2 = vmmov 0   ;;  %vm943_vm3 = vcmask 261120   ;;  %s3992_s2 = inlined_call_operand.vmem [shape: f32[36,32], index: 2, kind: input, shape index: {}]   ;;  %s3993_s0 = inlined_call_operand.vmem [shape: f32[512,36], index: 0, kind: input, shape index: {}]   ;;  %s3994_s1 = inlined_call_operand.vmem [shape: f32[2,512], index: 1, kind: input, shape index: {}]   ;;  %s3995_s3 = inlined_call_operand.vmem [shape: f32[1,32], index: 3, kind: input, shape index: {}]   ;;  %s3996_s4 = inlined_call_operand.vmem [shape: f32[32,128], index: 4, kind: input, shape index: {}]   ;;  %s3997_s7 = inlined_call_operand.vmem [shape: f32[128,128], index: 7, kind: input, shape index: {}]   ;;  %s3998_s8 = inlined_call_operand.vmem [shape: f32[256,128], index: 8, kind: input, shape index: {}]   ;;  %s3999_s10 = inlined_call_operand.vmem [shape: f32[128,128], index: 10, kind: input, shape index: {}]   ;;  %s4000_s6 = inlined_call_operand.vmem [shape: f32[1,256], index: 6, kind: input, shape index: {}]   ;;  %s4001_s5 = inlined_call_operand.vmem [shape: f32[1,128], index: 5, kind: input, shape index: {}]   ;;  %s4002_s12 = inlined_call_operand.vmem [shape: f32[128,256], index: 12, kind: input, shape index: {}]   ;;  %s4003_s9 = inlined_call_operand.vmem [shape: f32[1,128], index: 9, kind: input, shape index: {}]   ;;  %s4004_s11 = inlined_call_operand.vmem [shape: f32[1,128], index: 11, kind: input, shape index: {}]   ;;  %s4005_s13 = inlined_call_operand.vmem [shape: f32[1,256], index: 13, kind: input, shape index: {}]   ;;  %s4006_s14 = inlined_call_operand.vmem [shape: f32[2,256], index: 14, kind: output, shape index: {}]  }
   0x1   :  { %v111_v0 = vld [vmem:[%s3992_s2] sm:$0xff]  ;;  %v112_v1 = vld [vmem:[%s3992_s2 + $0x8] sm:$0xff]  ;;  %v113_v2 = vld [vmem:[%s3992_s2 + $0x10] sm:$0xff] }
   0x2   :  { %v2530_v3 = vpack.c.bf16 %v112_v1, %v111_v0  ;;  %v114_v4 = vld [vmem:[%s3992_s2 + $0x18] sm:$0xff]  ;;  %v47_v5 = vld [vmem:[%s3993_s0] sm:$0xff]  ;;  %v48_v8 = vld [vmem:[%s3993_s0 + $0x8] sm:$0xff] }
   0x3   :  { %v2534_v6 = vpack.c.bf16 %v114_v4, %v113_v2  ;;  %2283 = vmatprep.mubr.msk.f32.mxu0 %vm123_vm0, %v47_v5  ;;  %v115_v7 = vld [vmem:[%s3992_s2 + $0x20] sm:$0xf]  ;;  %v49_v9 = vld [vmem:[%s3993_s0 + $0x10] sm:$0xff]  ;;  %v50_v10 = vld [vmem:[%s3993_s0 + $0x18] sm:$0xff] }
   0x4   :  { %2531 = vmatprep.subr.bf16.mxu0 %v2530_v3  ;;  %v51_v11 = vld [vmem:[%s3993_s0 + $0x20] sm:$0xff]  ;;  %v52_v12 = vld [vmem:[%s3993_s0 + $0x28] sm:$0xff]  ;;  %v53_v13 = vld [vmem:[%s3993_s0 + $0x30] sm:$0xff] }
   0x5   :  { %2533 = vmatpush3.bf16.msra.mxu0 %v2530_v3  ;;  %v54_v14 = vld [vmem:[%s3993_s0 + $0x38] sm:$0xff]  ;;  %v55_v15 = vld [vmem:[%s3993_s0 + $0x40] sm:$0xff]  ;;  %v56_v16 = vld [vmem:[%s3993_s0 + $0x48] sm:$0xff] }
   0x6   :  { %2535 = vmatprep.subr.bf16.mxu0 %v2534_v6  ;;  %v57_v17 = vld [vmem:[%s3993_s0 + $0x50] sm:$0xff]  ;;  %v58_v18 = vld [vmem:[%s3993_s0 + $0x58] sm:$0xff]  ;;  %v59_v19 = vld [vmem:[%s3993_s0 + $0x60] sm:$0xff] }
   0x7   :  { %v60_v20 = vld [vmem:[%s3993_s0 + $0x68] sm:$0xff]  ;;  %v61_v21 = vld [vmem:[%s3993_s0 + $0x70] sm:$0xff]  ;;  %v62_v22 = vld [vmem:[%s3993_s0 + $0x78] sm:$0xff] }
   0x8   :  { %v63_v23 = vld [vmem:[%s3993_s0 + $0x80] sm:$0xff]  ;;  %v64_v24 = vld [vmem:[%s3993_s0 + $0x88] sm:$0xff]  ;;  %v65_v25 = vld [vmem:[%s3993_s0 + $0x90] sm:$0xff] }
   0x9   :  { %2537 = vmatpush3.bf16.msra.mxu0 %v2534_v6  ;;  %v66_v26 = vld [vmem:[%s3993_s0 + $0x98] sm:$0xff]  ;;  %v67_v27 = vld [vmem:[%s3993_s0 + $0xa0] sm:$0xff]  ;;  %v68_v28 = vld [vmem:[%s3993_s0 + $0xa8] sm:$0xff] }
   0xa   :  { %2281 = vmatprep.subr.msk.mxu0 %vm316_vm1, %v115_v7  ;;  %v69_v29 = vld [vmem:[%s3993_s0 + $0xb0] sm:$0xff]  ;;  %v70_v30 = vld [vmem:[%s3993_s0 + $0xb8] sm:$0xff]  ;;  %v71_v31 = vld [vmem:[%s3993_s0 + $0xc0] sm:$0xff] }
   0xb   :  { %v72_v32 = vld [vmem:[%s3993_s0 + $0xc8] sm:$0xff]  ;;  %v73_v33 = vld [vmem:[%s3993_s0 + $0xd0] sm:$0xff]  ;;  %v74_v34 = vld [vmem:[%s3993_s0 + $0xd8] sm:$0xff] }
   0xc   :  { %v75_v35 = vld [vmem:[%s3993_s0 + $0xe0] sm:$0xff]  ;;  %v76_v36 = vld [vmem:[%s3993_s0 + $0xe8] sm:$0xff]  ;;  %v77_v37 = vld [vmem:[%s3993_s0 + $0xf0] sm:$0xff] }
   0xd   :  { %2282 = vmatpush3.msk.msra.mxu0 %vm316_vm1, %v115_v7  ;;  %v78_v38 = vld [vmem:[%s3993_s0 + $0xf8] sm:$0xff]  ;;  %v79_v39 = vld [vmem:[%s3993_s0 + $0x100] sm:$0xff]  ;;  %v80_v40 = vld [vmem:[%s3993_s0 + $0x108] sm:$0xff]  ;;  %v2901_v7 = vmov 1983009808  }
   0xe   :  { %2284 = vmatmul.mubr.msk.f32.vlgmr.msra.gmra.mrb[0].mxu0 %vm123_vm0, %v48_v8  ;;  %v81_v41 = vld [vmem:[%s3993_s0 + $0x110] sm:$0xff]  ;;  %v82_v42 = vld [vmem:[%s3993_s0 + $0x118] sm:$0xff]  ;;  %v83_v43 = vld [vmem:[%s3993_s0 + $0x120] sm:$0xff]  ;;  %v773_v8 = vunpack.c.l.s4 %v2901_v7 }
   0xf   :  { %2286 = vmatprep.mubr.msk.f32.mxu0 %vm123_vm0, %v49_v9  ;;  %v84_v44 = vld [vmem:[%s3993_s0 + $0x128] sm:$0xff]  ;;  %v85_v45 = vld [vmem:[%s3993_s0 + $0x130] sm:$0xff]  ;;  %v86_v46 = vld [vmem:[%s3993_s0 + $0x138] sm:$0xff]  ;;  %v775_v9 = vlaneseq }
  0x10   :  { %v87_v47 = vld [vmem:[%s3993_s0 + $0x140] sm:$0xff]  ;;  %v88_v48 = vld [vmem:[%s3993_s0 + $0x148] sm:$0xff]  ;;  %v89_v49 = vld [vmem:[%s3993_s0 + $0x150] sm:$0xff] }
  0x11   :  { %v90_v50 = vld [vmem:[%s3993_s0 + $0x158] sm:$0xff]  ;;  %v91_v51 = vld [vmem:[%s3993_s0 + $0x160] sm:$0xff]  ;;  %v92_v52 = vld [vmem:[%s3993_s0 + $0x168] sm:$0xff] }
  0x12   :  { %2287 = vmatmul.mubr.msk.f32.gmra.mrb[2].mxu0 %vm123_vm0, %v50_v10  ;;  %v93_v53 = vld [vmem:[%s3993_s0 + $0x170] sm:$0xff]  ;;  %v94_v54 = vld [vmem:[%s3993_s0 + $0x178] sm:$0xff]  ;;  %v95_v55 = vld [vmem:[%s3993_s0 + $0x180] sm:$0xff]  ;;  %v774_v10 = vunpack.c.0.s8 %v773_v8 }
  0x13   :  { %2289 = vmatprep.mubr.msk.f32.mxu0 %vm123_vm0, %v51_v11  ;;  %v96_v56 = vld [vmem:[%s3993_s0 + $0x188] sm:$0xff]  ;;  %v97_v57 = vld [vmem:[%s3993_s0 + $0x190] sm:$0xff]  ;;  %v98_v58 = vld [vmem:[%s3993_s0 + $0x198] sm:$0xff]  ;;  %v3251_v11 = vshrl.u32 %v775_v9, 7 }
  0x14   :  { %v99_v59 = vld [vmem:[%s3993_s0 + $0x1a0] sm:$0xff]  ;;  %v100_v60 = vld [vmem:[%s3993_s0 + $0x1a8] sm:$0xff]  ;;  %v101_v61 = vld [vmem:[%s3993_s0 + $0x1b0] sm:$0xff] }
  0x15   :  { %v102_v62 = vld [vmem:[%s3993_s0 + $0x1b8] sm:$0xff]  ;;  %v103_v63 = vld [vmem:[%s3993_s0 + $0x1c0] sm:$0xff]  ;;  %v104_v0 = vld [vmem:[%s3993_s0 + $0x1c8] sm:$0xff] }
  0x16   :  { %2290 = vmatmul.mubr.msk.f32.gmra.mrb[4].mxu0 %vm123_vm0, %v52_v12  ;;  %v105_v1 = vld [vmem:[%s3993_s0 + $0x1d0] sm:$0xff]  ;;  %v106_v2 = vld [vmem:[%s3993_s0 + $0x1d8] sm:$0xff]  ;;  %v107_v3 = vld [vmem:[%s3993_s0 + $0x1e0] sm:$0xff]  ;;  %v777_v12 = vsub.s32 %v774_v10, %v3251_v11 }
  0x17   :  { %2292 = vmatprep.mubr.msk.f32.mxu0 %vm123_vm0, %v53_v13  ;;  %v108_v4 = vld [vmem:[%s3993_s0 + $0x1e8] sm:$0xff]  ;;  %v109_v5 = vld [vmem:[%s3993_s0 + $0x1f0] sm:$0xff]  ;;  %v110_v6 = vld [vmem:[%s3993_s0 + $0x1f8] sm:$0xff] }
  0x18   :  { %v769_v13 = vld [vmem:[%s3994_s1] sm:$0xff] }
  0x1a   :  { %2293 = vmatmul.mubr.msk.f32.gmra.mrb[6].mxu0 %vm123_vm0, %v54_v14  ;;  %v3257_v14 = vrot.slane %v769_v13, %v777_v12 }
  0x1b   :  { %2295 = vmatprep.mubr.msk.f32.mxu0 %vm123_vm0, %v55_v15 }
  0x1c   :  { %v786_v15 = vcombine.high %v3257_v14, %v3257_v14 }
  0x1e   :  { %2296 = vmatmul.mubr.msk.f32.gmra.mrb[8].mxu0 %vm123_vm0, %v56_v16  ;;  %856 = vmatprep.mubr.f32.mxu1 %v786_v15  ;;  %v3264_v16 = vld [vmem:[%s3995_s3] ss:$0 sm:$0xff] }
  0x1f   :  { %2298 = vmatprep.mubr.msk.f32.mxu0 %vm123_vm0, %v57_v17  ;;  %v771_v17 = vcombine.high %v769_v13, %v769_v13 }
  0x22   :  { %2299 = vmatmul.mubr.msk.f32.gmra.mrb[10].mxu0 %vm123_vm0, %v58_v18 }
  0x23   :  { %2301 = vmatprep.mubr.msk.f32.mxu0 %vm123_vm0, %v59_v19 }
  0x26   :  { %2302 = vmatmul.mubr.msk.f32.gmra.mrb[12].mxu0 %vm123_vm0, %v60_v20 }
  0x27   :  { %2304 = vmatprep.mubr.msk.f32.mxu0 %vm123_vm0, %v61_v21 }
  0x2a   :  { %2305 = vmatmul.mubr.msk.f32.gmra.mrb[14].mxu0 %vm123_vm0, %v62_v22 }
  0x2b   :  { %2307 = vmatprep.mubr.msk.f32.mxu0 %vm123_vm0, %v63_v23  ;;  %v3268_v23 = vrot.slane %v771_v17, %v777_v12 }
  0x2e   :  { %2308 = vmatmul.mubr.msk.f32.gmra.mrb[16].mxu0 %vm123_vm0, %v64_v24 }
  0x2f   :  { %2310 = vmatprep.mubr.msk.f32.mxu0 %vm123_vm0, %v65_v25 }
  0x32   :  { %2311 = vmatmul.mubr.msk.f32.gmra.mrb[18].mxu0 %vm123_vm0, %v66_v26 }
  0x33   :  { %2313 = vmatprep.mubr.msk.f32.mxu0 %vm123_vm0, %v67_v27 }
  0x36   :  { %2314 = vmatmul.mubr.msk.f32.gmra.mrb[20].mxu0 %vm123_vm0, %v68_v28 }
  0x37   :  { %2316 = vmatprep.mubr.msk.f32.mxu0 %vm123_vm0, %v69_v29 }
  0x3a   :  { %2317 = vmatmul.mubr.msk.f32.gmra.mrb[22].mxu0 %vm123_vm0, %v70_v30 }
  0x3b   :  { %2319 = vmatprep.mubr.msk.f32.mxu0 %vm123_vm0, %v71_v31 }
  0x3e   :  { %2320 = vmatmul.mubr.msk.f32.gmra.mrb[24].mxu0 %vm123_vm0, %v72_v32 }
  0x3f   :  { %2322 = vmatprep.mubr.msk.f32.mxu0 %vm123_vm0, %v73_v33 }
  0x42   :  { %2323 = vmatmul.mubr.msk.f32.gmra.mrb[26].mxu0 %vm123_vm0, %v74_v34 }
  0x43   :  { %2325 = vmatprep.mubr.msk.f32.mxu0 %vm123_vm0, %v75_v35 }
  0x46   :  { %2326 = vmatmul.mubr.msk.f32.gmra.mrb[28].mxu0 %vm123_vm0, %v76_v36 }
  0x47   :  { %2328 = vmatprep.mubr.msk.f32.mxu0 %vm123_vm0, %v77_v37 }
  0x4a   :  { %2329 = vmatmul.mubr.msk.f32.gmra.mrb[30].mxu0 %vm123_vm0, %v78_v38 }
  0x4b   :  { %2331 = vmatprep.mubr.msk.f32.mxu0 %vm123_vm0, %v79_v39 }
  0x4e   :  { %2332 = vmatmul.mubr.msk.f32.gmra.mrb[32].mxu0 %vm123_vm0, %v80_v40 }
  0x4f   :  { %2334 = vmatprep.mubr.msk.f32.mxu0 %vm123_vm0, %v81_v41 }
  0x52   :  { %2335 = vmatmul.mubr.msk.f32.gmra.mrb[34].mxu0 %vm123_vm0, %v82_v42 }
  0x53   :  { %2337 = vmatprep.mubr.msk.f32.mxu0 %vm123_vm0, %v83_v43 }
  0x56   :  { %2338 = vmatmul.mubr.msk.f32.gmra.mrb[36].mxu0 %vm123_vm0, %v84_v44 }
  0x57   :  { %2340 = vmatprep.mubr.msk.f32.mxu0 %vm123_vm0, %v85_v45 }
  0x5a   :  { %2341 = vmatmul.mubr.msk.f32.gmra.mrb[38].mxu0 %vm123_vm0, %v86_v46 }
  0x5b   :  { %2343 = vmatprep.mubr.msk.f32.mxu0 %vm123_vm0, %v87_v47 }
  0x5e   :  { %2344 = vmatmul.mubr.msk.f32.gmra.mrb[40].mxu0 %vm123_vm0, %v88_v48 }
  0x5f   :  { %2346 = vmatprep.mubr.msk.f32.mxu0 %vm123_vm0, %v89_v49 }
  0x62   :  { %2347 = vmatmul.mubr.msk.f32.gmra.mrb[42].mxu0 %vm123_vm0, %v90_v50 }
  0x63   :  { %2349 = vmatprep.mubr.msk.f32.mxu0 %vm123_vm0, %v91_v51 }
  0x66   :  { %2350 = vmatmul.mubr.msk.f32.gmra.mrb[44].mxu0 %vm123_vm0, %v92_v52 }
  0x67   :  { %2352 = vmatprep.mubr.msk.f32.mxu0 %vm123_vm0, %v93_v53 }
  0x6a   :  { %2353 = vmatmul.mubr.msk.f32.gmra.mrb[46].mxu0 %vm123_vm0, %v94_v54 }
  0x6b   :  { %2355 = vmatprep.mubr.msk.f32.mxu0 %vm123_vm0, %v95_v55 }
  0x6e   :  { %2356 = vmatmul.mubr.msk.f32.gmra.mrb[48].mxu0 %vm123_vm0, %v96_v56 }
  0x6f   :  { %2358 = vmatprep.mubr.msk.f32.mxu0 %vm123_vm0, %v97_v57 }
  0x72   :  { %2359 = vmatmul.mubr.msk.f32.gmra.mrb[50].mxu0 %vm123_vm0, %v98_v58 }
  0x73   :  { %2361 = vmatprep.mubr.msk.f32.mxu0 %vm123_vm0, %v99_v59 }
  0x76   :  { %2362 = vmatmul.mubr.msk.f32.gmra.mrb[52].mxu0 %vm123_vm0, %v100_v60 }
  0x77   :  { %2364 = vmatprep.mubr.msk.f32.mxu0 %vm123_vm0, %v101_v61 }
  0x7a   :  { %2365 = vmatmul.mubr.msk.f32.gmra.mrb[54].mxu0 %vm123_vm0, %v102_v62 }
  0x7b   :  { %2367 = vmatprep.mubr.msk.f32.mxu0 %vm123_vm0, %v103_v63 }
  0x7e   :  { %2368 = vmatmul.mubr.msk.f32.gmra.mrb[56].mxu0 %vm123_vm0, %v104_v0 }
  0x7f   :  { %2370 = vmatprep.mubr.msk.f32.mxu0 %vm123_vm0, %v105_v1 }
  0x82   :  { %2371 = vmatmul.mubr.msk.f32.gmra.mrb[58].mxu0 %vm123_vm0, %v106_v2 }
  0x83   :  { %2373 = vmatprep.mubr.msk.f32.mxu0 %vm123_vm0, %v107_v3 }
  0x86   :  { %2374 = vmatmul.mubr.msk.f32.gmra.mrb[60].mxu0 %vm123_vm0, %v108_v4 }
  0x87   :  { %2376 = vmatprep.mubr.msk.f32.mxu0 %vm123_vm0, %v109_v5 }
  0x8a   :  { %2377 = vmatmul.mubr.msk.f32.gmra.mrb[62].mxu0 %vm123_vm0, %v110_v6 }
  0xe1   :  { %v2285_v18 = vpop.f32.mrb[0].mxu0 }
  0xe2   :  { %v392_v19 = vadd.f32 %v2285_v18, %v3264_v16  ;;  %v386_v20 = vpop.f32.mrb[1].mxu0 }
  0xe3   :  { %v387_v21 = vadd.f32 %v3264_v16, %v386_v20 }
  0xe4   :  { %v706_v22 = vmax.f32 %v392_v19, 0.0 }
  0xe5   :  { %v705_v24 = vmax.f32 %v387_v21, 0.0  ;;  %v2288_v25 = vpop.f32.mrb[2].mxu0 }
  0xe6   :  { %v402_v26 = vadd.f32 %v2288_v25, %v3264_v16  ;;  %v396_v27 = vpop.f32.mrb[3].mxu0 }
  0xe7   :  { %v397_v28 = vadd.f32 %v3264_v16, %v396_v27  ;;  %v2540_v29 = vpack.c.bf16 %v706_v22, %v705_v24 }
  0xe8   :  { %v708_v30 = vmax.f32 %v402_v26, 0.0 }
  0xe9   :  { %v707_v31 = vmax.f32 %v397_v28, 0.0  ;;  %v2291_v32 = vpop.f32.mrb[4].mxu0 }
  0xea   :  { %v412_v33 = vadd.f32 %v2291_v32, %v3264_v16  ;;  %v406_v34 = vpop.f32.mrb[5].mxu0 }
  0xeb   :  { %v3273_v35 = vpack.c.bf16 %v708_v30, %v707_v31  ;;  %v407_v36 = vadd.f32 %v3264_v16, %v406_v34 }
  0xec   :  { %v710_v37 = vmax.f32 %v412_v33, 0.0 }
  0xed   :  { %v709_v38 = vmax.f32 %v407_v36, 0.0  ;;  %v2294_v39 = vpop.f32.mrb[6].mxu0 }
  0xee   :  { %v422_v40 = vadd.f32 %v2294_v39, %v3264_v16  ;;  %v416_v41 = vpop.f32.mrb[7].mxu0 }
  0xef   :  { %v3277_v42 = vpack.c.bf16 %v710_v37, %v709_v38  ;;  %v417_v43 = vadd.f32 %v3264_v16, %v416_v41 }
  0xf0   :  { %v712_v44 = vmax.f32 %v422_v40, 0.0 }
  0xf1   :  { %v711_v45 = vmax.f32 %v417_v43, 0.0  ;;  %v2297_v46 = vpop.f32.mrb[8].mxu0 }
  0xf2   :  { %v432_v47 = vadd.f32 %v2297_v46, %v3264_v16  ;;  %v426_v48 = vpop.f32.mrb[9].mxu0 }
  0xf3   :  { %v3281_v49 = vpack.c.bf16 %v712_v44, %v711_v45  ;;  %v427_v50 = vadd.f32 %v3264_v16, %v426_v48 }
  0xf4   :  { %v714_v51 = vmax.f32 %v432_v47, 0.0 }
  0xf5   :  { %v713_v52 = vmax.f32 %v427_v50, 0.0  ;;  %v2300_v53 = vpop.f32.mrb[10].mxu0 }
  0xf6   :  { %v442_v54 = vadd.f32 %v2300_v53, %v3264_v16  ;;  %v436_v55 = vpop.f32.mrb[11].mxu0 }
  0xf7   :  { %v3285_v56 = vpack.c.bf16 %v714_v51, %v713_v52  ;;  %v437_v57 = vadd.f32 %v3264_v16, %v436_v55 }
  0xf8   :  { %v716_v58 = vmax.f32 %v442_v54, 0.0 }
  0xf9   :  { %v715_v59 = vmax.f32 %v437_v57, 0.0  ;;  %v2303_v60 = vpop.f32.mrb[12].mxu0 }
  0xfa   :  { %v452_v61 = vadd.f32 %v2303_v60, %v3264_v16  ;;  %v446_v62 = vpop.f32.mrb[13].mxu0 }
  0xfb   :  { %v3289_v63 = vpack.c.bf16 %v716_v58, %v715_v59  ;;  %v447_v0 = vadd.f32 %v3264_v16, %v446_v62 }
  0xfc   :  { %v718_v1 = vmax.f32 %v452_v61, 0.0 }
  0xfd   :  { %v717_v2 = vmax.f32 %v447_v0, 0.0  ;;  %v2306_v3 = vpop.f32.mrb[14].mxu0 }
  0xfe   :  { %v462_v4 = vadd.f32 %v2306_v3, %v3264_v16  ;;  %v456_v5 = vpop.f32.mrb[15].mxu0 }
  0xff   :  { %v3293_v6 = vpack.c.bf16 %v718_v1, %v717_v2  ;;  %v457_v7 = vadd.f32 %v3264_v16, %v456_v5 }
 0x100   :  { %v720_v8 = vmax.f32 %v462_v4, 0.0 }
 0x101   :  { %v719_v9 = vmax.f32 %v457_v7, 0.0  ;;  %v2309_v10 = vpop.f32.mrb[16].mxu0 }
 0x102   :  { %v472_v12 = vadd.f32 %v2309_v10, %v3264_v16  ;;  %v466_v13 = vpop.f32.mrb[17].mxu0 }
 0x103   :  { %v3297_v15 = vpack.c.bf16 %v720_v8, %v719_v9  ;;  %v467_v17 = vadd.f32 %v3264_v16, %v466_v13 }
 0x104   :  { %v722_v18 = vmax.f32 %v472_v12, 0.0 }
 0x105   :  { %v721_v19 = vmax.f32 %v467_v17, 0.0  ;;  %v2312_v20 = vpop.f32.mrb[18].mxu0 }
 0x106   :  { %v482_v21 = vadd.f32 %v2312_v20, %v3264_v16  ;;  %v476_v22 = vpop.f32.mrb[19].mxu0 }
 0x107   :  { %v477_v24 = vadd.f32 %v3264_v16, %v476_v22  ;;  %v2538_v25 = vpack.c.bf16 %v722_v18, %v721_v19 }
 0x108   :  { %v724_v26 = vmax.f32 %v482_v21, 0.0  ;;  %v787_v21 = vcombine.high %v3268_v23, %v3268_v23 }
 0x109   :  { %v723_v27 = vmax.f32 %v477_v24, 0.0  ;;  %v2315_v28 = vpop.f32.mrb[20].mxu0  ;;  %2539 = vmatprep.subr.bf16.mxu1 %v2538_v25 }
 0x10a   :  { %v492_v30 = vadd.f32 %v2315_v28, %v3264_v16  ;;  %v486_v31 = vpop.f32.mrb[21].mxu0  ;;  %2541 = vmatpush3.bf16.msra.mxu1 %v2540_v29 }
 0x10b   :  { %v2542_v32 = vpack.c.bf16 %v724_v26, %v723_v27  ;;  %v487_v33 = vadd.f32 %v3264_v16, %v486_v31 }
 0x10c   :  { %v726_v34 = vmax.f32 %v492_v30, 0.0 }
 0x10d   :  { %v725_v36 = vmax.f32 %v487_v33, 0.0  ;;  %v2318_v37 = vpop.f32.mrb[22].mxu0  ;;  %2543 = vmatprep.subr.bf16.mxu1 %v2542_v32 }
 0x10e   :  { %v502_v38 = vadd.f32 %v2318_v37, %v3264_v16  ;;  %v496_v39 = vpop.f32.mrb[23].mxu0  ;;  %2545 = vmatpush3.bf16.msra.mxu1 %v3273_v35 }
 0x10f   :  { %v2546_v40 = vpack.c.bf16 %v726_v34, %v725_v36  ;;  %v497_v41 = vadd.f32 %v3264_v16, %v496_v39 }
 0x110   :  { %v728_v43 = vmax.f32 %v502_v38, 0.0 }
 0x111   :  { %v727_v44 = vmax.f32 %v497_v41, 0.0  ;;  %v2321_v45 = vpop.f32.mrb[24].mxu0  ;;  %2547 = vmatprep.subr.bf16.mxu1 %v2546_v40 }
 0x112   :  { %v512_v29 = vadd.f32 %v2321_v45, %v3264_v16  ;;  %v506_v46 = vpop.f32.mrb[25].mxu0  ;;  %2549 = vmatpush3.bf16.msra.mxu1 %v3277_v42 }
 0x113   :  { %v2550_v47 = vpack.c.bf16 %v728_v43, %v727_v44  ;;  %v507_v48 = vadd.f32 %v3264_v16, %v506_v46 }
 0x114   :  { %v730_v50 = vmax.f32 %v512_v29, 0.0 }
 0x115   :  { %v729_v51 = vmax.f32 %v507_v48, 0.0  ;;  %v2324_v52 = vpop.f32.mrb[26].mxu0  ;;  %2551 = vmatprep.subr.bf16.mxu1 %v2550_v47 }
 0x116   :  { %v522_v35 = vadd.f32 %v2324_v52, %v3264_v16  ;;  %v516_v53 = vpop.f32.mrb[27].mxu0  ;;  %2553 = vmatpush3.bf16.msra.mxu1 %v3281_v49 }
 0x117   :  { %v2554_v54 = vpack.c.bf16 %v730_v50, %v729_v51  ;;  %v517_v55 = vadd.f32 %v3264_v16, %v516_v53 }
 0x118   :  { %v732_v57 = vmax.f32 %v522_v35, 0.0 }
 0x119   :  { %v731_v58 = vmax.f32 %v517_v55, 0.0  ;;  %v2327_v59 = vpop.f32.mrb[28].mxu0  ;;  %2555 = vmatprep.subr.bf16.mxu1 %v2554_v54 }
 0x11a   :  { %v532_v42 = vadd.f32 %v2327_v59, %v3264_v16  ;;  %v526_v60 = vpop.f32.mrb[29].mxu0  ;;  %2557 = vmatpush3.bf16.msra.mxu1 %v3285_v56 }
 0x11b   :  { %v2558_v61 = vpack.c.bf16 %v732_v57, %v731_v58  ;;  %v527_v62 = vadd.f32 %v3264_v16, %v526_v60 }
 0x11c   :  { %v734_v0 = vmax.f32 %v532_v42, 0.0 }
 0x11d   :  { %v733_v1 = vmax.f32 %v527_v62, 0.0  ;;  %v2330_v2 = vpop.f32.mrb[30].mxu0  ;;  %2559 = vmatprep.subr.bf16.mxu1 %v2558_v61 }
 0x11e   :  { %v542_v49 = vadd.f32 %v2330_v2, %v3264_v16  ;;  %v536_v3 = vpop.f32.mrb[31].mxu0  ;;  %2561 = vmatpush3.bf16.msra.mxu1 %v3289_v63 }
 0x11f   :  { %v2562_v4 = vpack.c.bf16 %v734_v0, %v733_v1  ;;  %v537_v5 = vadd.f32 %v3264_v16, %v536_v3 }
 0x120   :  { %v736_v7 = vmax.f32 %v542_v49, 0.0 }
 0x121   :  { %v735_v8 = vmax.f32 %v537_v5, 0.0  ;;  %v2333_v9 = vpop.f32.mrb[32].mxu0  ;;  %2563 = vmatprep.subr.bf16.mxu1 %v2562_v4 }
 0x122   :  { %v552_v56 = vadd.f32 %v2333_v9, %v3264_v16  ;;  %v546_v10 = vpop.f32.mrb[33].mxu0  ;;  %2565 = vmatpush3.bf16.msra.mxu1 %v3293_v6 }
 0x123   :  { %v2566_v12 = vpack.c.bf16 %v736_v7, %v735_v8  ;;  %v547_v13 = vadd.f32 %v3264_v16, %v546_v10 }
 0x124   :  { %v738_v17 = vmax.f32 %v552_v56, 0.0 }
 0x125   :  { %v737_v18 = vmax.f32 %v547_v13, 0.0  ;;  %v2336_v19 = vpop.f32.mrb[34].mxu0  ;;  %2567 = vmatprep.subr.bf16.mxu1 %v2566_v12 }
 0x126   :  { %v562_v63 = vadd.f32 %v2336_v19, %v3264_v16  ;;  %v556_v20 = vpop.f32.mrb[35].mxu0  ;;  %2569 = vmatpush3.bf16.msra.mxu1 %v3297_v15 }
 0x127   :  { %v3326_v22 = vpack.c.bf16 %v738_v17, %v737_v18  ;;  %v557_v24 = vadd.f32 %v3264_v16, %v556_v20 }
 0x128   :  { %v740_v6 = vmax.f32 %v562_v63, 0.0 }
 0x129   :  { %v739_v25 = vmax.f32 %v557_v24, 0.0  ;;  %v2339_v26 = vpop.f32.mrb[36].mxu0  ;;  %857 = vmatmul.mubr.f32.vlgmr.msra.gmra.mrb[0].mxu1 %v3257_v14 }
 0x12a   :  { %v572_v27 = vadd.f32 %v2339_v26, %v3264_v16  ;;  %v566_v28 = vpop.f32.mrb[37].mxu0  ;;  %926 = vmatprep.mubr.f32.mxu1 %v787_v21 }
 0x12b   :  { %v3331_v30 = vpack.c.bf16 %v740_v6, %v739_v25  ;;  %v567_v15 = vadd.f32 %v3264_v16, %v566_v28 }
 0x12c   :  { %v742_v31 = vmax.f32 %v572_v27, 0.0 }
 0x12d   :  { %v741_v32 = vmax.f32 %v567_v15, 0.0  ;;  %v2342_v33 = vpop.f32.mrb[38].mxu0 }
 0x12e   :  { %v582_v34 = vadd.f32 %v2342_v33, %v3264_v16  ;;  %v576_v36 = vpop.f32.mrb[39].mxu0 }
 0x12f   :  { %v3335_v37 = vpack.c.bf16 %v742_v31, %v741_v32  ;;  %v577_v38 = vadd.f32 %v3264_v16, %v576_v36 }
 0x130   :  { %v744_v39 = vmax.f32 %v582_v34, 0.0 }
 0x131   :  { %v743_v14 = vmax.f32 %v577_v38, 0.0  ;;  %v2345_v40 = vpop.f32.mrb[40].mxu0 }
 0x132   :  { %v592_v41 = vadd.f32 %v2345_v40, %v3264_v16  ;;  %v586_v43 = vpop.f32.mrb[41].mxu0 }
 0x133   :  { %v3339_v44 = vpack.c.bf16 %v744_v39, %v743_v14  ;;  %v587_v45 = vadd.f32 %v3264_v16, %v586_v43 }
 0x134   :  { %v746_v29 = vmax.f32 %v592_v41, 0.0 }
 0x135   :  { %v745_v46 = vmax.f32 %v587_v45, 0.0  ;;  %v2348_v47 = vpop.f32.mrb[42].mxu0 }
 0x136   :  { %v602_v48 = vadd.f32 %v2348_v47, %v3264_v16  ;;  %v596_v50 = vpop.f32.mrb[43].mxu0 }
 0x137   :  { %v3343_v51 = vpack.c.bf16 %v746_v29, %v745_v46  ;;  %v597_v52 = vadd.f32 %v3264_v16, %v596_v50 }
 0x138   :  { %v748_v35 = vmax.f32 %v602_v48, 0.0 }
 0x139   :  { %v747_v53 = vmax.f32 %v597_v52, 0.0  ;;  %v2351_v54 = vpop.f32.mrb[44].mxu0 }
 0x13a   :  { %v612_v55 = vadd.f32 %v2351_v54, %v3264_v16  ;;  %v606_v57 = vpop.f32.mrb[45].mxu0 }
 0x13b   :  { %v3347_v58 = vpack.c.bf16 %v748_v35, %v747_v53  ;;  %v607_v59 = vadd.f32 %v3264_v16, %v606_v57 }
 0x13c   :  { %v750_v42 = vmax.f32 %v612_v55, 0.0 }
 0x13d   :  { %v749_v60 = vmax.f32 %v607_v59, 0.0  ;;  %v2354_v61 = vpop.f32.mrb[46].mxu0 }
 0x13e   :  { %v622_v62 = vadd.f32 %v2354_v61, %v3264_v16  ;;  %v616_v0 = vpop.f32.mrb[47].mxu0 }
 0x13f   :  { %v3351_v1 = vpack.c.bf16 %v750_v42, %v749_v60  ;;  %v617_v2 = vadd.f32 %v3264_v16, %v616_v0 }
 0x140   :  { %v752_v49 = vmax.f32 %v622_v62, 0.0 }
 0x141   :  { %v751_v3 = vmax.f32 %v617_v2, 0.0  ;;  %v2357_v4 = vpop.f32.mrb[48].mxu0 }
 0x142   :  { %v632_v5 = vadd.f32 %v2357_v4, %v3264_v16  ;;  %v626_v7 = vpop.f32.mrb[49].mxu0 }
 0x143   :  { %v3355_v8 = vpack.c.bf16 %v752_v49, %v751_v3  ;;  %v627_v9 = vadd.f32 %v3264_v16, %v626_v7  ;;  %v2902_v49 = vmov 0.0|0.0   ;;  %v935_v3 = vld [vmem:[%s3996_s4 + $0x18] sm:$0xff] }
 0x144   :  { %v754_v56 = vmax.f32 %v632_v5, 0.0  ;;  %2664 = vmatprep.subr.bf16.mxu0 %v2902_v49  ;;  %v2904_v5 = vmov 0.0  }
 0x145   :  { %v753_v10 = vmax.f32 %v627_v9, 0.0  ;;  %v2360_v12 = vpop.f32.mrb[50].mxu0  ;;  %2457 = vmatprep.mubr.msk.f32.mxu0 %vm2903_vm2, %v2904_v5 }
 0x146   :  { %v642_v13 = vadd.f32 %v2360_v12, %v3264_v16  ;;  %v636_v17 = vpop.f32.mrb[51].mxu0  ;;  %v1030_v12 = vld [vmem:[%s3997_s7 + $0x8] sm:$0xff] }
 0x147   :  { %v2570_v18 = vpack.c.bf16 %v754_v56, %v753_v10  ;;  %v637_v19 = vadd.f32 %v3264_v16, %v636_v17  ;;  %v1029_v10 = vld [vmem:[%s3997_s7] sm:$0xff] }
 0x148   :  { %v756_v63 = vmax.f32 %v642_v13, 0.0 }
 0x149   :  { %v755_v20 = vmax.f32 %v637_v19, 0.0  ;;  %v2363_v21 = vpop.f32.mrb[52].mxu0  ;;  %2571 = vmatprep.subr.bf16.mxu1 %v2570_v18  ;;  %v2609_v18 = vpack.c.bf16 %v1030_v12, %v1029_v10  ;;  %v1124_v10 = vld [vmem:[%s3998_s8 + $0x10] sm:$0xff]  ;;  %v1125_v12 = vld [vmem:[%s3998_s8 + $0x18] sm:$0xff] }
 0x14a   :  { %v652_v24 = vadd.f32 %v2363_v21, %v3264_v16  ;;  %v646_v6 = vpop.f32.mrb[53].mxu0  ;;  %2573 = vmatpush3.bf16.msra.mxu1 %v3326_v22 }
 0x14b   :  { %v2574_v25 = vpack.c.bf16 %v756_v63, %v755_v20  ;;  %v647_v26 = vadd.f32 %v3264_v16, %v646_v6  ;;  %v1031_v63 = vld [vmem:[%s3997_s7 + $0x10] sm:$0xff]  ;;  %v1032_v20 = vld [vmem:[%s3997_s7 + $0x18] sm:$0xff]  ;;  %v1034_v6 = vld [vmem:[%s3997_s7 + $0x28] sm:$0xff] }
 0x14c   :  { %v758_v27 = vmax.f32 %v652_v24, 0.0  ;;  %v2612_v21 = vpack.c.bf16 %v1032_v20, %v1031_v63  ;;  %v1033_v24 = vld [vmem:[%s3997_s7 + $0x20] sm:$0xff]  ;;  %v1127_v20 = vld [vmem:[%s3998_s8 + $0x28] sm:$0xff] }
 0x14d   :  { %v757_v28 = vmax.f32 %v647_v26, 0.0  ;;  %v2366_v15 = vpop.f32.mrb[54].mxu0  ;;  %2575 = vmatprep.subr.bf16.mxu1 %v2574_v25  ;;  %v2615_v25 = vpack.c.bf16 %v1034_v6, %v1033_v24  ;;  %v1035_v26 = vld [vmem:[%s3997_s7 + $0x30] sm:$0xff]  ;;  %v1126_v63 = vld [vmem:[%s3998_s8 + $0x20] sm:$0xff]  ;;  %v1145_v24 = vld [vmem:[%s3998_s8 + $0xb8] sm:$0xff] }
 0x14e   :  { %v662_v31 = vadd.f32 %v2366_v15, %v3264_v16  ;;  %v656_v32 = vpop.f32.mrb[55].mxu0  ;;  %2577 = vmatpush3.bf16.msra.mxu1 %v3331_v30  ;;  %v1037_v15 = vld [vmem:[%s3997_s7 + $0x40] sm:$0xff]  ;;  %v3589_v6 = vpack.c.bf16 %v1127_v20, %v1126_v63 }
 0x14f   :  { %v2578_v33 = vpack.c.bf16 %v758_v27, %v757_v28  ;;  %v657_v34 = vadd.f32 %v3264_v16, %v656_v32  ;;  %v1036_v27 = vld [vmem:[%s3997_s7 + $0x38] sm:$0xff] }
 0x150   :  { %v760_v36 = vmax.f32 %v662_v31, 0.0  ;;  %v2618_v28 = vpack.c.bf16 %v1036_v27, %v1035_v26  ;;  %v1038_v31 = vld [vmem:[%s3997_s7 + $0x48] sm:$0xff]  ;;  %v1128_v26 = vld [vmem:[%s3998_s8 + $0x30] sm:$0xff]  ;;  %v1129_v27 = vld [vmem:[%s3998_s8 + $0x38] sm:$0xff] }
 0x151   :  { %v759_v38 = vmax.f32 %v657_v34, 0.0  ;;  %v2369_v39 = vpop.f32.mrb[56].mxu0  ;;  %2579 = vmatprep.subr.bf16.mxu1 %v2578_v33  ;;  %v2621_v32 = vpack.c.bf16 %v1038_v31, %v1037_v15  ;;  %v1039_v33 = vld [vmem:[%s3997_s7 + $0x50] sm:$0xff]  ;;  %v1040_v34 = vld [vmem:[%s3997_s7 + $0x58] sm:$0xff]  ;;  %v1147_v15 = vld [vmem:[%s3998_s8 + $0xc8] sm:$0xff]  ;;  %v3607_v31 = vpack.c.bf16 %v1129_v27, %v1128_v26 }
 0x152   :  { %v672_v22 = vadd.f32 %v2369_v39, %v3264_v16  ;;  %v666_v14 = vpop.f32.mrb[57].mxu0  ;;  %2581 = vmatpush3.bf16.msra.mxu1 %v3335_v37  ;;  %v1042_v39 = vld [vmem:[%s3997_s7 + $0x68] sm:$0xff]  ;;  %v1329_v27 = vld [vmem:[%s4002_s12 + $0x58] sm:$0xff] }
 0x153   :  { %v2582_v40 = vpack.c.bf16 %v760_v36, %v759_v38  ;;  %v667_v41 = vadd.f32 %v3264_v16, %v666_v14  ;;  %v2624_v36 = vpack.c.bf16 %v1040_v34, %v1039_v33  ;;  %v1041_v38 = vld [vmem:[%s3997_s7 + $0x60] sm:$0xff]  ;;  %v1043_v14 = vld [vmem:[%s3997_s7 + $0x70] sm:$0xff]  ;;  %v1131_v34 = vld [vmem:[%s3998_s8 + $0x48] sm:$0xff] }
 0x154   :  { %v762_v43 = vmax.f32 %v672_v22, 0.0  ;;  %v2627_v22 = vpack.c.bf16 %v1042_v39, %v1041_v38  ;;  %v1130_v33 = vld [vmem:[%s3998_s8 + $0x40] sm:$0xff]  ;;  %v1149_v38 = vld [vmem:[%s3998_s8 + $0xd8] sm:$0xff]  ;;  %v1327_v26 = vld [vmem:[%s4002_s12 + $0x48] sm:$0xff] }
 0x155   :  { %v761_v45 = vmax.f32 %v667_v41, 0.0  ;;  %v2372_v29 = vpop.f32.mrb[58].mxu0  ;;  %2583 = vmatprep.subr.bf16.mxu1 %v2582_v40  ;;  %v1044_v40 = vld [vmem:[%s3997_s7 + $0x78] sm:$0xff]  ;;  %v3625_v39 = vpack.c.bf16 %v1131_v34, %v1130_v33  ;;  %v1326_v33 = vld [vmem:[%s4002_s12 + $0x40] sm:$0xff]  ;;  %v1328_v34 = vld [vmem:[%s4002_s12 + $0x50] sm:$0xff] }
 0x156   :  { %v682_v30 = vadd.f32 %v2372_v29, %v3264_v16  ;;  %v676_v46 = vpop.f32.mrb[59].mxu0  ;;  %2585 = vmatpush3.bf16.msra.mxu1 %v3339_v44  ;;  %v2630_v41 = vpack.c.bf16 %v1044_v40, %v1043_v14  ;;  %v1132_v14 = vld [vmem:[%s3998_s8 + $0x50] sm:$0xff]  ;;  %v1133_v40 = vld [vmem:[%s3998_s8 + $0x58] sm:$0xff] }
 0x157   :  { %v2586_v47 = vpack.c.bf16 %v762_v43, %v761_v45  ;;  %v677_v48 = vadd.f32 %v3264_v16, %v676_v46  ;;  %v1138_v43 = vld [vmem:[%s3998_s8 + $0x80] sm:$0xff]  ;;  %v1139_v45 = vld [vmem:[%s3998_s8 + $0x88] sm:$0xff] }
 0x158   :  { %v764_v50 = vmax.f32 %v682_v30, 0.0  ;;  %v3464_v29 = vpack.c.bf16 %v1139_v45, %v1138_v43  ;;  %v1225_v30 = vld [vmem:[%s3999_s10] sm:$0xff]  ;;  %v1226_v46 = vld [vmem:[%s3999_s10 + $0x8] sm:$0xff]  ;;  %v3643_v45 = vpack.c.bf16 %v1133_v40, %v1132_v14  ;;  %v3761_v14 = vpack.c.bf16 %v1328_v34, %v1326_v33 }
 0x159   :  { %v763_v52 = vmax.f32 %v677_v48, 0.0  ;;  %v2375_v35 = vpop.f32.mrb[60].mxu0  ;;  %2587 = vmatprep.subr.bf16.mxu1 %v2586_v47  ;;  %v1227_v47 = vld [vmem:[%s3999_s10 + $0x10] sm:$0xff]  ;;  %v3476_v48 = vpack.c.bf16 %v1226_v46, %v1225_v30  ;;  %v1151_v43 = vld [vmem:[%s3998_s8 + $0xe8] sm:$0xff]  ;;  %v1134_v46 = vld [vmem:[%s3998_s8 + $0x60] sm:$0xff] }
 0x15a   :  { %v692_v37 = vadd.f32 %v2375_v35, %v3264_v16  ;;  %v686_v53 = vpop.f32.mrb[61].mxu0  ;;  %2589 = vmatpush3.bf16.msra.mxu1 %v3343_v51  ;;  %v1229_v35 = vld [vmem:[%s3999_s10 + $0x20] sm:$0xff] }
 0x15b   :  { %v2590_v54 = vpack.c.bf16 %v764_v50, %v763_v52  ;;  %v687_v55 = vadd.f32 %v3264_v16, %v686_v53  ;;  %v1228_v50 = vld [vmem:[%s3999_s10 + $0x18] sm:$0xff]  ;;  %2666 = vmatpush3.bf16.msra.mxu0 %v3476_v48 }
 0x15c   :  { %v766_v57 = vmax.f32 %v692_v37, 0.0  ;;  %v3482_v52 = vpack.c.bf16 %v1228_v50, %v1227_v47  ;;  %2667 = vmatprep.subr.bf16.mxu0 %v2902_v49  ;;  %v1230_v37 = vld [vmem:[%s3999_s10 + $0x28] sm:$0xff]  ;;  %v1152_v50 = vld [vmem:[%s3998_s8 + $0xf0] sm:$0xff] }
 0x15d   :  { %v765_v59 = vmax.f32 %v687_v55, 0.0  ;;  %v2378_v42 = vpop.f32.mrb[62].mxu0  ;;  %2591 = vmatprep.subr.bf16.mxu1 %v2590_v54  ;;  %v3492_v53 = vpack.c.bf16 %v1230_v37, %v1229_v35  ;;  %v1231_v54 = vld [vmem:[%s3999_s10 + $0x30] sm:$0xff]  ;;  %v1232_v55 = vld [vmem:[%s3999_s10 + $0x38] sm:$0xff]  ;;  %v1135_v47 = vld [vmem:[%s3998_s8 + $0x68] sm:$0xff] }
 0x15e   :  { %v702_v44 = vadd.f32 %v2378_v42, %v3264_v16  ;;  %v696_v60 = vpop.f32.mrb[63].mxu0  ;;  %2593 = vmatpush3.bf16.msra.mxu1 %v3347_v58  ;;  %v932_v58 = vld [vmem:[%s3996_s4] sm:$0xff]  ;;  %v1234_v42 = vld [vmem:[%s3999_s10 + $0x48] sm:$0xff]  ;;  %v1153_v35 = vld [vmem:[%s3998_s8 + $0xf8] sm:$0xff]  ;;  %v3661_v37 = vpack.c.bf16 %v1135_v47, %v1134_v46 }
 0x15f   :  { %v2594_v61 = vpack.c.bf16 %v766_v57, %v765_v59  ;;  %v697_v62 = vadd.f32 %v3264_v16, %v696_v60  ;;  %v933_v16 = vld [vmem:[%s3996_s4 + $0x8] sm:$0xff]  ;;  %2669 = vmatpush3.bf16.msra.mxu0 %v3482_v52  ;;  %v3502_v57 = vpack.c.bf16 %v1232_v55, %v1231_v54  ;;  %v1233_v59 = vld [vmem:[%s3999_s10 + $0x40] sm:$0xff]  ;;  %v1235_v60 = vld [vmem:[%s3999_s10 + $0x50] sm:$0xff]  ;;  %v3664_v54 = vpack.c.bf16 %v1153_v35, %v1152_v50 }
 0x160   :  { %v768_v0 = vmax.f32 %v702_v44, 0.0  ;;  %2670 = vmatprep.subr.bf16.mxu0 %v2902_v49  ;;  %v3512_v44 = vpack.c.bf16 %v1234_v42, %v1233_v59  ;;  %v1136_v55 = vld [vmem:[%s3998_s8 + $0x70] sm:$0xff]  ;;  %v1137_v59 = vld [vmem:[%s3998_s8 + $0x78] sm:$0xff]  ;;  %v1021_v42 = vsub.s32 0, %v3251_v11  ;;  %v1335_v46 = vld [vmem:[%s4002_s12 + $0x88] sm:$0xff] }
 0x161   :  { %v767_v2 = vmax.f32 %v697_v62, 0.0  ;;  %2595 = vmatprep.subr.bf16.mxu1 %v2594_v61  ;;  %v1236_v61 = vld [vmem:[%s3999_s10 + $0x58] sm:$0xff] }
 0x162   :  { %2597 = vmatpush3.bf16.msra.mxu1 %v3351_v1  ;;  %v2603_v1 = vpack.c.bf16 %v933_v16, %v932_v58  ;;  %v3522_v62 = vpack.c.bf16 %v1236_v61, %v1235_v60  ;;  %v3537_v58 = vld [vmem:[%s4000_s6] sm:$0x3]  ;;  %v3674_v60 = vpack.c.bf16 %v1137_v59, %v1136_v55  ;;  %v1337_v47 = vld [vmem:[%s4002_s12 + $0x98] sm:$0xff]  ;;  %v1336_v59 = vld [vmem:[%s4002_s12 + $0x90] sm:$0xff] }
 0x163   :  { %v2598_v51 = vpack.c.bf16 %v768_v0, %v767_v2  ;;  %2672 = vmatpush3.bf16.msra.mxu0 %v3492_v53  ;;  %v1025_v0 = vsub.s32 1, %v3251_v11  ;;  %v1122_v2 = vld [vmem:[%s3998_s8] sm:$0xff]  ;;  %v3680_v61 = vrot.slane %v3537_v58, %v1021_v42  ;;  %v3782_v35 = vpack.c.bf16 %v1337_v47, %v1335_v46 }
 0x164   :  { %2673 = vmatprep.subr.bf16.mxu0 %v2902_v49  ;;  %v1951_v16 = vld [vmem:[%s4001_s5] ss:$0 sm:$0xff] }
 0x165   :  { %2599 = vmatprep.subr.bf16.mxu1 %v2598_v51  ;;  %v1123_v51 = vld [vmem:[%s3998_s8 + $0x8] sm:$0xff]  ;;  %v1334_v55 = vld [vmem:[%s4002_s12 + $0x80] sm:$0xff] }
 0x166   :  { %2601 = vmatpush3.bf16.msra.mxu1 %v3355_v8 }
 0x167   :  { %2602 = vmatprep.subr.bf16.mxu1 %v2902_v49  ;;  %2675 = vmatpush3.bf16.msra.mxu0 %v3502_v57 }
 0x168   :  { %2676 = vmatprep.subr.bf16.mxu0 %v2902_v49 }
 0x169   :  { %927 = vmatmul.mubr.f32.vlgmr.msra.gmra.mrb[2].mxu1 %v3268_v23  ;;  %v934_v23 = vld [vmem:[%s3996_s4 + $0x10] sm:$0xff] }
 0x16a   :  { %2604 = vmatpush3.bf16.msra.mxu1 %v2603_v1  ;;  %v2606_v4 = vpack.c.bf16 %v935_v3, %v934_v23  ;;  %2387 = vmatprep.mubr.msk.f32.mxu1 %vm2903_vm2, %v2904_v5  ;;  %v1140_v1 = vld [vmem:[%s3998_s8 + $0x90] sm:$0xff]  ;;  %v1141_v23 = vld [vmem:[%s3998_s8 + $0x98] sm:$0xff] }
 0x16b   :  { %2605 = vmatprep.subr.bf16.mxu1 %v2902_v49  ;;  %2678 = vmatpush3.bf16.msra.mxu0 %v3512_v44 }
 0x16c   :  { %2679 = vmatprep.subr.bf16.mxu0 %v2902_v49 }
 0x16e   :  { %2607 = vmatpush3.bf16.msra.mxu1 %v2606_v4  ;;  %v3548_v4 = vpack.c.bf16 %v1123_v51, %v1122_v2  ;;  %v1237_v2 = vld [vmem:[%s3999_s10 + $0x60] sm:$0xff]  ;;  %v1238_v51 = vld [vmem:[%s3999_s10 + $0x68] sm:$0xff] }
 0x16f   :  { %2608 = vmatprep.subr.bf16.mxu1 %v2902_v49  ;;  %2681 = vmatpush3.bf16.msra.mxu0 %v3522_v62 }
 0x170   :  { %2682 = vmatprep.subr.bf16.mxu0 %v2902_v49 }
 0x1fc   :  { %v2057_v7 = vpop.f32.mrb[0].mxu1 }
 0x1fd   :  { %v2058_v8 = vpop.f32.mrb[1].mxu1 }
 0x1fe   :  { %v2059_v9 = vadd.f32 %v2058_v8, %v2057_v7  ;;  %v3553_v7 = vrot.slane %v3537_v58, %v1025_v0  ;;  %v3694_v58 = vpack.c.bf16 %v1238_v51, %v1237_v2  ;;  %v1339_v2 = vld [vmem:[%s4002_s12 + $0xa8] sm:$0xff]  ;;  %v1341_v51 = vld [vmem:[%s4002_s12 + $0xb8] sm:$0xff] }
 0x200   :  { %2684 = vmatpush3.bf16.msra.mxu0 %v3694_v58 }
 0x201   :  { %2685 = vmatprep.subr.bf16.mxu0 %v2902_v49 }
 0x23c   :  { %v2092_v56 = vpop.f32.mrb[2].mxu1 }
 0x23d   :  { %v2093_v13 = vpop.f32.mrb[3].mxu1 }
 0x23e   :  { %v2094_v17 = vadd.f32 %v2093_v13, %v2092_v56  ;;  %v3555_v56 = vpack.c.bf16 %v1141_v23, %v1140_v1  ;;  %v1142_v13 = vld [vmem:[%s3998_s8 + $0xa0] sm:$0xff]  ;;  %v1240_v1 = vld [vmem:[%s3999_s10 + $0x78] sm:$0xff] }
 0x240   :  { %v929_v19 = vadd.f32 %v2094_v17, %v2059_v9  ;;  %v1143_v17 = vld [vmem:[%s3998_s8 + $0xa8] sm:$0xff] }
 0x242   :  { %2388 = vmatmul.mubr.msk.f32.vlgmr.msra.gmra.mrb[4].mxu1 %vm943_vm3, %v929_v19  ;;  %v3574_v19 = vpack.c.bf16 %v1143_v17, %v1142_v13  ;;  %v1323_v13 = vld [vmem:[%s4002_s12 + $0x28] sm:$0xff]  ;;  %v1325_v17 = vld [vmem:[%s4002_s12 + $0x38] sm:$0xff] }
 0x243   :  { %2610 = vmatpush3.bf16.msra.mxu1 %v2609_v18  ;;  %2422 = vmatprep.mubr.msk.f32.mxu1 %vm2903_vm2, %v2904_v5  ;;  %v3570_v18 = vpack.c.bf16 %v1125_v12, %v1124_v10  ;;  %v1320_v12 = vld [vmem:[%s4002_s12 + $0x10] sm:$0xff]  ;;  %v3727_v20 = vpack.c.bf16 %v1325_v17, %v1323_v13 }
 0x244   :  { %2611 = vmatprep.subr.bf16.mxu1 %v2902_v49 }
 0x247   :  { %2613 = vmatpush3.bf16.msra.mxu1 %v2612_v21  ;;  %v1144_v21 = vld [vmem:[%s3998_s8 + $0xb0] sm:$0xff] }
 0x248   :  { %2614 = vmatprep.subr.bf16.mxu1 %v2902_v49 }
 0x24b   :  { %2616 = vmatpush3.bf16.msra.mxu1 %v2615_v25  ;;  %v3592_v25 = vpack.c.bf16 %v1145_v24, %v1144_v21  ;;  %v1322_v21 = vld [vmem:[%s4002_s12 + $0x20] sm:$0xff]  ;;  %v1324_v24 = vld [vmem:[%s4002_s12 + $0x30] sm:$0xff] }
 0x24c   :  { %2617 = vmatprep.subr.bf16.mxu1 %v2902_v49 }
 0x24f   :  { %2619 = vmatpush3.bf16.msra.mxu1 %v2618_v28  ;;  %v1146_v28 = vld [vmem:[%s3998_s8 + $0xc0] sm:$0xff] }
 0x250   :  { %2620 = vmatprep.subr.bf16.mxu1 %v2902_v49 }
 0x253   :  { %2622 = vmatpush3.bf16.msra.mxu1 %v2621_v32  ;;  %v3610_v32 = vpack.c.bf16 %v1147_v15, %v1146_v28  ;;  %v3743_v28 = vpack.c.bf16 %v1324_v24, %v1322_v21  ;;  %v3746_v15 = vpack.c.bf16 %v1329_v27, %v1327_v26  ;;  %v1342_v21 = vld [vmem:[%s4002_s12 + $0xc0] sm:$0xff]  ;;  %v1344_v24 = vld [vmem:[%s4002_s12 + $0xd0] sm:$0xff]  ;;  %v1347_v26 = vld [vmem:[%s4002_s12 + $0xe8] sm:$0xff] }
 0x254   :  { %2623 = vmatprep.subr.bf16.mxu1 %v2902_v49  ;;  %v1349_v27 = vld [vmem:[%s4002_s12 + $0xf8] sm:$0xff]  ;;  %v3833_v33 = vpack.c.bf16 %v1344_v24, %v1342_v21  ;;  %v1423_v24 = vld [vmem:[%s4005_s13] sm:$0x3] }
 0x255   :  { %v3836_v34 = vpack.c.bf16 %v1349_v27, %v1347_v26  ;;  %v3901_v27 = vrot.slane %v1423_v24, %v1025_v0 }
 0x257   :  { %2625 = vmatpush3.bf16.msra.mxu1 %v2624_v36  ;;  %v1148_v36 = vld [vmem:[%s3998_s8 + $0xd0] sm:$0xff] }
 0x258   :  { %2626 = vmatprep.subr.bf16.mxu1 %v2902_v49 }
 0x25b   :  { %2628 = vmatpush3.bf16.msra.mxu1 %v2627_v22  ;;  %v3628_v22 = vpack.c.bf16 %v1149_v38, %v1148_v36  ;;  %v1331_v36 = vld [vmem:[%s4002_s12 + $0x68] sm:$0xff]  ;;  %v1333_v38 = vld [vmem:[%s4002_s12 + $0x78] sm:$0xff] }
 0x25c   :  { %2629 = vmatprep.subr.bf16.mxu1 %v2902_v49  ;;  %v3764_v40 = vpack.c.bf16 %v1333_v38, %v1331_v36 }
 0x25f   :  { %2631 = vmatpush3.bf16.msra.mxu1 %v2630_v41  ;;  %v1150_v41 = vld [vmem:[%s3998_s8 + $0xe0] sm:$0xff] }
 0x260   :  { %2633 = vmatprep.subr.bf16.mxu1 %v3464_v29  ;;  %v3646_v30 = vpack.c.bf16 %v1151_v43, %v1150_v41  ;;  %v1330_v41 = vld [vmem:[%s4002_s12 + $0x60] sm:$0xff]  ;;  %v1332_v43 = vld [vmem:[%s4002_s12 + $0x70] sm:$0xff] }
 0x261   :  { %v3779_v50 = vpack.c.bf16 %v1332_v43, %v1330_v41  ;;  %v1953_v41 = vld [vmem:[%s4003_s9] ss:$0 sm:$0xff] }
 0x315   :  { %v1013_v3 = vpop.f32.mrb[4].mxu1 }
 0x316   :  { %v1014_v8 = vadd.f32 %v1951_v16, %v1013_v3  ;;  %v2389_v9 = vpop.f32.mrb[5].mxu1  ;;  %v1239_v16 = vld [vmem:[%s3999_s10 + $0x70] sm:$0xff]  ;;  %v1319_v3 = vld [vmem:[%s4002_s12 + $0x8] sm:$0xff] }
 0x317   :  { %v3700_v23 = vpack.c.bf16 %v1240_v1, %v1239_v16  ;;  %v1318_v9 = vld [vmem:[%s4002_s12] sm:$0xff]  ;;  %v3797_v16 = vpack.c.bf16 %v1336_v59, %v1334_v55  ;;  %v3800_v1 = vpack.c.bf16 %v1341_v51, %v1339_v2  ;;  %v1348_v51 = vld [vmem:[%s4002_s12 + $0xf0] sm:$0xff] }
 0x318   :  { %2423 = vmatmul.mubr.f32.vlgmr.msra.gmra.mrb[6].mxu1 %v1014_v8  ;;  %v1321_v8 = vld [vmem:[%s4002_s12 + $0x18] sm:$0xff]  ;;  %v3725_v63 = vpack.c.bf16 %v1320_v12, %v1318_v9  ;;  %v1343_v9 = vld [vmem:[%s4002_s12 + $0xc8] sm:$0xff]  ;;  %v1346_v2 = vld [vmem:[%s4002_s12 + $0xe0] sm:$0xff] }
 0x319   :  { %2635 = vmatpush3.bf16.msra.mxu1 %v3548_v4  ;;  %1218 = vmatprep.mubr.f32.mxu1 %v3553_v7  ;;  %v3714_v10 = vpack.c.bf16 %v1321_v8, %v1319_v3  ;;  %v1338_v3 = vld [vmem:[%s4002_s12 + $0xa0] sm:$0xff]  ;;  %v1340_v8 = vld [vmem:[%s4002_s12 + $0xb0] sm:$0xff]  ;;  %v1345_v12 = vld [vmem:[%s4002_s12 + $0xd8] sm:$0xff] }
 0x31a   :  { %2637 = vmatprep.subr.bf16.mxu1 %v3555_v56  ;;  %2687 = vmatpush3.bf16.msra.mxu0 %v3700_v23  ;;  %v3815_v13 = vpack.c.bf16 %v1340_v8, %v1338_v3  ;;  %v3818_v17 = vpack.c.bf16 %v1345_v12, %v1343_v9  ;;  %v3868_v3 = vpack.c.bf16 %v1348_v51, %v1346_v2  ;;  %v3875_v8 = vld [vmem:[%s4004_s11] ss:$0 sm:$0xff] }
 0x31b   :  { %2721 = vmatprep.subr.bf16.mxu0 %v3464_v29 }
 0x31d   :  { %2639 = vmatpush3.bf16.msra.mxu1 %v3570_v18 }
 0x31e   :  { %2641 = vmatprep.subr.bf16.mxu1 %v3574_v19 }
 0x321   :  { %2643 = vmatpush3.bf16.msra.mxu1 %v3589_v6 }
 0x322   :  { %2645 = vmatprep.subr.bf16.mxu1 %v3592_v25 }
 0x325   :  { %2647 = vmatpush3.bf16.msra.mxu1 %v3607_v31 }
 0x326   :  { %2649 = vmatprep.subr.bf16.mxu1 %v3610_v32 }
 0x329   :  { %2651 = vmatpush3.bf16.msra.mxu1 %v3625_v39 }
 0x32a   :  { %2653 = vmatprep.subr.bf16.mxu1 %v3628_v22 }
 0x32d   :  { %2655 = vmatpush3.bf16.msra.mxu1 %v3643_v45 }
 0x32e   :  { %2657 = vmatprep.subr.bf16.mxu1 %v3646_v30 }
 0x331   :  { %2659 = vmatpush3.bf16.msra.mxu1 %v3661_v37 }
 0x332   :  { %2661 = vmatprep.subr.bf16.mxu1 %v3664_v54 }
 0x335   :  { %2663 = vmatpush3.bf16.msra.mxu1 %v3674_v60 }
 0x336   :  { %2689 = vmatprep.subr.bf16.mxu1 %v3714_v10 }
 0x338   :  { %1219 = vmatmul.mubr.f32.vlgmr.msra.gmra.mrb[8].mxu1 %v3680_v61 }
 0x339   :  { %1414 = vmatprep.mubr.f32.mxu1 %v2904_v5  ;;  %2691 = vmatpush1.bf16.msra.mxu1 %v3725_v63 }
 0x33a   :  { %2693 = vmatprep.subr.bf16.mxu1 %v3727_v20 }
 0x33d   :  { %2695 = vmatpush1.bf16.msra.mxu1 %v3743_v28 }
 0x33e   :  { %2697 = vmatprep.subr.bf16.mxu1 %v3746_v15 }
 0x341   :  { %2699 = vmatpush1.bf16.msra.mxu1 %v3761_v14 }
 0x342   :  { %2701 = vmatprep.subr.bf16.mxu1 %v3764_v40 }
 0x345   :  { %2703 = vmatpush1.bf16.msra.mxu1 %v3779_v50 }
 0x346   :  { %2705 = vmatprep.subr.bf16.mxu1 %v3782_v35 }
 0x349   :  { %2707 = vmatpush1.bf16.msra.mxu1 %v3797_v16 }
 0x34a   :  { %2709 = vmatprep.subr.bf16.mxu1 %v3800_v1 }
 0x34d   :  { %2711 = vmatpush1.bf16.msra.mxu1 %v3815_v13 }
 0x34e   :  { %2713 = vmatprep.subr.bf16.mxu1 %v3818_v17 }
 0x351   :  { %2715 = vmatpush1.bf16.msra.mxu1 %v3833_v33 }
 0x352   :  { %2717 = vmatprep.subr.bf16.mxu1 %v3836_v34 }
 0x355   :  { %2719 = vmatpush1.bf16.msra.mxu1 %v3868_v3 }
 0x356   :  { %2752 = vmatprep.subr.bf16.mxu1 %v2902_v49 }
 0x3eb   :  { %v1118_v36 = vpop.f32.mrb[6].mxu1 }
 0x3ec   :  { %v2424_v38 = vpop.f32.mrb[7].mxu1  ;;  %v3843_v47 = vadd.f32 %v1953_v41, %v1118_v36 }
 0x3ed   :  { %v3906_v38 = vrot.slane %v1423_v24, %v1021_v42 }
 0x40b   :  { %v2149_v43 = vpop.f32.mrb[8].mxu1 }
 0x40c   :  { %v2150_v46 = vpop.f32.mrb[9].mxu1 }
 0x40d   :  { %v2151_v55 = vadd.f32 %v2150_v46, %v2149_v43 }
 0x40f   :  { %v1224_v59 = vadd.f32 %v2151_v55, %v3843_v47 }
 0x411   :  { %2458 = vmatmul.mubr.f32.vlgmr.msra.gmra.mrb[64].mxu0 %v1224_v59 }
 0x412   :  { %2723 = vmatpush3.bf16.msra.mxu0 %v3548_v4 }
 0x413   :  { %2725 = vmatprep.subr.bf16.mxu0 %v3555_v56 }
 0x416   :  { %2727 = vmatpush3.bf16.msra.mxu0 %v3570_v18 }
 0x417   :  { %2729 = vmatprep.subr.bf16.mxu0 %v3574_v19 }
 0x41a   :  { %2731 = vmatpush3.bf16.msra.mxu0 %v3589_v6 }
 0x41b   :  { %2733 = vmatprep.subr.bf16.mxu0 %v3592_v25 }
 0x41e   :  { %2735 = vmatpush3.bf16.msra.mxu0 %v3607_v31 }
 0x41f   :  { %2737 = vmatprep.subr.bf16.mxu0 %v3610_v32 }
 0x422   :  { %2739 = vmatpush3.bf16.msra.mxu0 %v3625_v39 }
 0x423   :  { %2741 = vmatprep.subr.bf16.mxu0 %v3628_v22 }
 0x426   :  { %2743 = vmatpush3.bf16.msra.mxu0 %v3643_v45 }
 0x427   :  { %2745 = vmatprep.subr.bf16.mxu0 %v3646_v30 }
 0x42a   :  { %2747 = vmatpush3.bf16.msra.mxu0 %v3661_v37 }
 0x42b   :  { %2749 = vmatprep.subr.bf16.mxu0 %v3664_v54 }
 0x42e   :  { %2751 = vmatpush3.bf16.msra.mxu0 %v3674_v60 }
 0x42f   :  { %2777 = vmatprep.subr.bf16.mxu0 %v3714_v10 }
 0x4e4   :  { %v1314_v9 = vpop.f32.mrb[64].mxu0 }
 0x4e5   :  { %v1315_v12 = vadd.f32 %v3875_v8, %v1314_v9  ;;  %v2459_v21 = vpop.f32.mrb[65].mxu0 }
 0x4e7   :  { %1415 = vmatmul.mubr.f32.vlgmr.msra.gmra.mrb[10].mxu1 %v1315_v12 }
 0x4e8   :  { %2754 = vmatpush3.bf16.msra.mxu1 %v3476_v48  ;;  %2492 = vmatprep.mubr.msk.f32.mxu1 %vm2903_vm2, %v2904_v5 }
 0x4e9   :  { %2755 = vmatprep.subr.bf16.mxu1 %v2902_v49 }
 0x4ec   :  { %2757 = vmatpush3.bf16.msra.mxu1 %v3482_v52 }
 0x4ed   :  { %2758 = vmatprep.subr.bf16.mxu1 %v2902_v49 }
 0x4f0   :  { %2760 = vmatpush3.bf16.msra.mxu1 %v3492_v53 }
 0x4f1   :  { %2761 = vmatprep.subr.bf16.mxu1 %v2902_v49 }
 0x4f4   :  { %2763 = vmatpush3.bf16.msra.mxu1 %v3502_v57 }
 0x4f5   :  { %2764 = vmatprep.subr.bf16.mxu1 %v2902_v49 }
 0x4f8   :  { %2766 = vmatpush3.bf16.msra.mxu1 %v3512_v44 }
 0x4f9   :  { %2767 = vmatprep.subr.bf16.mxu1 %v2902_v49 }
 0x4fc   :  { %2769 = vmatpush3.bf16.msra.mxu1 %v3522_v62 }
 0x4fd   :  { %2770 = vmatprep.subr.bf16.mxu1 %v2902_v49 }
 0x500   :  { %2772 = vmatpush3.bf16.msra.mxu1 %v3694_v58 }
 0x501   :  { %2773 = vmatprep.subr.bf16.mxu1 %v2902_v49 }
 0x504   :  { %2775 = vmatpush3.bf16.msra.mxu1 %v3700_v23 }
 0x505   :  { %2809 = vmatprep.subr.bf16.mxu1 %v3464_v29 }
 0x5ba   :  { %v1416_v26 = vpop.f32.mrb[10].mxu1 }
 0x5bb   :  { %v1421_v36 = vadd.f32 %v1416_v26, %v3680_v61  ;;  %v1418_v41 = vpop.f32.mrb[11].mxu1 }
 0x5bc   :  { %v1422_v43 = vadd.f32 %v1418_v41, %v3553_v7 }
 0x5bd   :  { %v1435_v46 = vadd.f32 %v3906_v38, %v1421_v36 }
 0x5be   :  { %v3910_v29 = vadd.f32 %v3901_v27, %v1422_v43 }
 0x5c0   :  { %1501 = vmatprep.mubr.f32.mxu0 %v3910_v29 }
 0x5c1   :  { %1502 = vmatmul.mubr.f32.vlgmr.msra.gmra.mrb[66].mxu0 %v1435_v46 }
 0x5c2   :  { %2779 = vmatpush1.bf16.msra.mxu0 %v3725_v63  ;;  %1642 = vmatprep.mubr.f32.mxu0 %v2904_v5 }
 0x5c3   :  { %2781 = vmatprep.subr.bf16.mxu0 %v3727_v20 }
 0x5c6   :  { %2783 = vmatpush1.bf16.msra.mxu0 %v3743_v28 }
 0x5c7   :  { %2785 = vmatprep.subr.bf16.mxu0 %v3746_v15 }
 0x5ca   :  { %2787 = vmatpush1.bf16.msra.mxu0 %v3761_v14 }
 0x5cb   :  { %2789 = vmatprep.subr.bf16.mxu0 %v3764_v40 }
 0x5ce   :  { %2791 = vmatpush1.bf16.msra.mxu0 %v3779_v50 }
 0x5cf   :  { %2793 = vmatprep.subr.bf16.mxu0 %v3782_v35 }
 0x5d2   :  { %2795 = vmatpush1.bf16.msra.mxu0 %v3797_v16 }
 0x5d3   :  { %2797 = vmatprep.subr.bf16.mxu0 %v3800_v1 }
 0x5d6   :  { %2799 = vmatpush1.bf16.msra.mxu0 %v3815_v13 }
 0x5d7   :  { %2801 = vmatprep.subr.bf16.mxu0 %v3818_v17 }
 0x5da   :  { %2803 = vmatpush1.bf16.msra.mxu0 %v3833_v33 }
 0x5db   :  { %2805 = vmatprep.subr.bf16.mxu0 %v3836_v34 }
 0x5de   :  { %2807 = vmatpush1.bf16.msra.mxu0 %v3868_v3 }
 0x5df   :  { %2840 = vmatprep.subr.bf16.mxu0 %v2902_v49 }
 0x694   :  { %v2201_v11 = vpop.f32.mrb[66].mxu0 }
 0x695   :  { %v2202_v0 = vpop.f32.mrb[67].mxu0 }
 0x696   :  { %v2203_v7 = vadd.f32 %v2202_v0, %v2201_v11 }
 0x698   :  { %v1507_v42 = vadd.f32 %v2203_v7, %v3843_v47 }
 0x69a   :  { %2493 = vmatmul.mubr.f32.vlgmr.msra.gmra.mrb[12].mxu1 %v1507_v42 }
 0x69b   :  { %2811 = vmatpush3.bf16.msra.mxu1 %v3548_v4 }
 0x69c   :  { %2813 = vmatprep.subr.bf16.mxu1 %v3555_v56 }
 0x69f   :  { %2815 = vmatpush3.bf16.msra.mxu1 %v3570_v18 }
 0x6a0   :  { %2817 = vmatprep.subr.bf16.mxu1 %v3574_v19 }
 0x6a3   :  { %2819 = vmatpush3.bf16.msra.mxu1 %v3589_v6 }
 0x6a4   :  { %2821 = vmatprep.subr.bf16.mxu1 %v3592_v25 }
 0x6a7   :  { %2823 = vmatpush3.bf16.msra.mxu1 %v3607_v31 }
 0x6a8   :  { %2825 = vmatprep.subr.bf16.mxu1 %v3610_v32 }
 0x6ab   :  { %2827 = vmatpush3.bf16.msra.mxu1 %v3625_v39 }
 0x6ac   :  { %2829 = vmatprep.subr.bf16.mxu1 %v3628_v22 }
 0x6af   :  { %2831 = vmatpush3.bf16.msra.mxu1 %v3643_v45 }
 0x6b0   :  { %2833 = vmatprep.subr.bf16.mxu1 %v3646_v30 }
 0x6b3   :  { %2835 = vmatpush3.bf16.msra.mxu1 %v3661_v37 }
 0x6b4   :  { %2837 = vmatprep.subr.bf16.mxu1 %v3664_v54 }
 0x6b7   :  { %2839 = vmatpush3.bf16.msra.mxu1 %v3674_v60 }
 0x6b8   :  { %2865 = vmatprep.subr.bf16.mxu1 %v3714_v10 }
 0x76d   :  { %v1574_v4 = vpop.f32.mrb[12].mxu1 }
 0x76e   :  { %v1575_v56 = vadd.f32 %v3875_v8, %v1574_v4  ;;  %v2494_v18 = vpop.f32.mrb[13].mxu1 }
 0x770   :  { %1643 = vmatmul.mubr.f32.vlgmr.msra.gmra.mrb[68].mxu0 %v1575_v56 }
 0x771   :  { %2842 = vmatpush3.bf16.msra.mxu0 %v3476_v48  ;;  %2527 = vmatprep.mubr.msk.f32.mxu0 %vm2903_vm2, %v2904_v5 }
 0x772   :  { %2843 = vmatprep.subr.bf16.mxu0 %v2902_v49 }
 0x775   :  { %2845 = vmatpush3.bf16.msra.mxu0 %v3482_v52 }
 0x776   :  { %2846 = vmatprep.subr.bf16.mxu0 %v2902_v49 }
 0x779   :  { %2848 = vmatpush3.bf16.msra.mxu0 %v3492_v53 }
 0x77a   :  { %2849 = vmatprep.subr.bf16.mxu0 %v2902_v49 }
 0x77d   :  { %2851 = vmatpush3.bf16.msra.mxu0 %v3502_v57 }
 0x77e   :  { %2852 = vmatprep.subr.bf16.mxu0 %v2902_v49 }
 0x781   :  { %2854 = vmatpush3.bf16.msra.mxu0 %v3512_v44 }
 0x782   :  { %2855 = vmatprep.subr.bf16.mxu0 %v2902_v49 }
 0x785   :  { %2857 = vmatpush3.bf16.msra.mxu0 %v3522_v62 }
 0x786   :  { %2858 = vmatprep.subr.bf16.mxu0 %v2902_v49 }
 0x789   :  { %2860 = vmatpush3.bf16.msra.mxu0 %v3694_v58 }
 0x78a   :  { %2861 = vmatprep.subr.bf16.mxu0 %v2902_v49 }
 0x78d   :  { %2863 = vmatpush3.bf16.msra.mxu0 %v3700_v23 }
 0x843   :  { %v1644_v48 = vpop.f32.mrb[68].mxu0 }
 0x844   :  { %v1649_v52 = vadd.f32 %v1644_v48, %v1435_v46  ;;  %v1646_v53 = vpop.f32.mrb[69].mxu0 }
 0x845   :  { %v1650_v57 = vadd.f32 %v1646_v53, %v3910_v29 }
 0x846   :  { %v1651_v44 = vadd.f32 %v1649_v52, %v3906_v38 }
 0x847   :  { %v1652_v19 = vadd.f32 %v1650_v57, %v3901_v27 }
 0x849   :  { %1717 = vmatprep.mubr.f32.mxu1 %v1652_v19 }
 0x84a   :  { %1718 = vmatmul.mubr.f32.vlgmr.msra.gmra.mrb[14].mxu1 %v1651_v44 }
 0x84b   :  { %2867 = vmatpush1.bf16.msra.mxu1 %v3725_v63  ;;  %1858 = vmatprep.mubr.f32.mxu1 %v2904_v5 }
 0x84c   :  { %2869 = vmatprep.subr.bf16.mxu1 %v3727_v20 }
 0x84f   :  { %2871 = vmatpush1.bf16.msra.mxu1 %v3743_v28 }
 0x850   :  { %2873 = vmatprep.subr.bf16.mxu1 %v3746_v15 }
 0x853   :  { %2875 = vmatpush1.bf16.msra.mxu1 %v3761_v14 }
 0x854   :  { %2877 = vmatprep.subr.bf16.mxu1 %v3764_v40 }
 0x857   :  { %2879 = vmatpush1.bf16.msra.mxu1 %v3779_v50 }
 0x858   :  { %2881 = vmatprep.subr.bf16.mxu1 %v3782_v35 }
 0x85b   :  { %2883 = vmatpush1.bf16.msra.mxu1 %v3797_v16 }
 0x85c   :  { %2885 = vmatprep.subr.bf16.mxu1 %v3800_v1 }
 0x85f   :  { %2887 = vmatpush1.bf16.msra.mxu1 %v3815_v13 }
 0x860   :  { %2889 = vmatprep.subr.bf16.mxu1 %v3818_v17 }
 0x863   :  { %2891 = vmatpush1.bf16.msra.mxu1 %v3833_v33 }
 0x864   :  { %2893 = vmatprep.subr.bf16.mxu1 %v3836_v34 }
 0x867   :  { %2895 = vmatpush1.bf16.msra.mxu1 %v3868_v3 }
 0x91d   :  { %v2253_v49 = vpop.f32.mrb[14].mxu1 }
 0x91e   :  { %v2254_v5 = vpop.f32.mrb[15].mxu1 }
 0x91f   :  { %v2255_v62 = vadd.f32 %v2254_v5, %v2253_v49 }
 0x921   :  { %v1723_v6 = vadd.f32 %v2255_v62, %v3843_v47 }
 0x923   :  { %2528 = vmatmul.mubr.f32.vlgmr.msra.gmra.mrb[70].mxu0 %v1723_v6 }
 0x9f6   :  { %v1790_v25 = vpop.f32.mrb[70].mxu0 }
 0x9f7   :  { %v1791_v31 = vadd.f32 %v3875_v8, %v1790_v25  ;;  %v2529_v32 = vpop.f32.mrb[71].mxu0 }
 0x9f9   :  { %1859 = vmatmul.mubr.f32.vlgmr.msra.gmra.mrb[16].mxu1 %v1791_v31 }
 0xacc   :  { %v1860_v39 = vpop.f32.mrb[16].mxu1 }
 0xacd   :  { %v1865_v22 = vadd.f32 %v1860_v39, %v1651_v44  ;;  %v1862_v45 = vpop.f32.mrb[17].mxu1 }
 0xace   :  { %v1866_v30 = vadd.f32 %v1862_v45, %v1652_v19 }
 0xacf   :  { %v1867_v37 = vadd.f32 %v1865_v22, %v3906_v38 }
 0xad0   :  { %v1868_v54 = vadd.f32 %v1866_v30, %v3901_v27 }
 0xad2   :  { %v1871_v60 = vcombine.low %v1867_v37, %v1868_v54 }
 0xad4   :  { %1955 = vst.sshfl [vmem:[%s4006_s14] sm:$0x33 pattern:$0x76325410] %v1871_v60 }

// kernel: _lambda_.3
= control target key start
LH: loop header
LB: loop body
LE: loop exit
PB: predicated region body
PF: predicated region fallthrough
CT: control target
= control target key end

     0   :  { %vm1181_vm0 = vmmov 0   ;;  %s1978_s3 = inlined_call_operand.vmem [shape: f32[256,384], index: 3, kind: input, shape index: {}]   ;;  %s1979_s0 = inlined_call_operand.vmem [shape: f32[2,256], index: 0, kind: input, shape index: {}]   ;;  %s1980_s4 = inlined_call_operand.vmem [shape: f32[256,384], index: 4, kind: input, shape index: {}]   ;;  %s1981_s1 = inlined_call_operand.vmem [shape: f32[2,256], index: 1, kind: input, shape index: {}]   ;;  %s1982_s5 = inlined_call_operand.vmem [shape: f32[384,128], index: 5, kind: input, shape index: {}]   ;;  %s1983_s2 = inlined_call_operand.vmem [shape: f32[1,384], index: 2, kind: input, shape index: {}]   ;;  %s1984_s6 = inlined_call_operand.vmem [shape: f32[2,384], index: 6, kind: output, shape index: {0}]   ;;  %s1985_s7 = inlined_call_operand.vmem [shape: f32[2,128], index: 7, kind: output, shape index: {1}]  }
   0x1   :  { %v28_v0 = vld [vmem:[%s1978_s3 + $0x8] sm:$0xff]  ;;  %v31_v1 = vld [vmem:[%s1978_s3 + $0x20] sm:$0xff]  ;;  %v30_v4 = vld [vmem:[%s1978_s3 + $0x18] sm:$0xff] }
   0x2   :  { %v27_v2 = vld [vmem:[%s1978_s3] sm:$0xff]  ;;  %v923_v3 = vpack.c.bf16 %v31_v1, %v28_v0  ;;  %v34_v5 = vld [vmem:[%s1978_s3 + $0x38] sm:$0xff]  ;;  %v37_v6 = vld [vmem:[%s1978_s3 + $0x50] sm:$0xff] }
   0x3   :  { %v925_v7 = vpack.c.bf16 %v30_v4, %v27_v2  ;;  %v927_v8 = vpack.c.bf16 %v37_v6, %v34_v5  ;;  %v33_v9 = vld [vmem:[%s1978_s3 + $0x30] sm:$0xff]  ;;  %v36_v10 = vld [vmem:[%s1978_s3 + $0x48] sm:$0xff]  ;;  %v43_v12 = vld [vmem:[%s1978_s3 + $0x80] sm:$0xff] }
   0x4   :  { %v40_v11 = vld [vmem:[%s1978_s3 + $0x68] sm:$0xff]  ;;  %924 = vmatprep.subr.bf16.mxu0 %v923_v3  ;;  %v929_v13 = vpack.c.bf16 %v36_v10, %v33_v9  ;;  %v39_v15 = vld [vmem:[%s1978_s3 + $0x60] sm:$0xff]  ;;  %v42_v16 = vld [vmem:[%s1978_s3 + $0x78] sm:$0xff] }
   0x5   :  { %926 = vmatpush1.bf16.msra.mxu0 %v925_v7  ;;  %v931_v14 = vpack.c.bf16 %v43_v12, %v40_v11  ;;  %v46_v17 = vld [vmem:[%s1978_s3 + $0x98] sm:$0xff]  ;;  %v49_v18 = vld [vmem:[%s1978_s3 + $0xb0] sm:$0xff]  ;;  %v933_v19 = vpack.c.bf16 %v42_v16, %v39_v15  ;;  %v48_v22 = vld [vmem:[%s1978_s3 + $0xa8] sm:$0xff] }
   0x6   :  { %928 = vmatprep.subr.bf16.mxu0 %v927_v8  ;;  %v935_v20 = vpack.c.bf16 %v49_v18, %v46_v17  ;;  %v45_v21 = vld [vmem:[%s1978_s3 + $0x90] sm:$0xff]  ;;  %v52_v23 = vld [vmem:[%s1978_s3 + $0xc8] sm:$0xff]  ;;  %v55_v24 = vld [vmem:[%s1978_s3 + $0xe0] sm:$0xff] }
   0x7   :  { %v937_v25 = vpack.c.bf16 %v48_v22, %v45_v21  ;;  %v939_v26 = vpack.c.bf16 %v55_v24, %v52_v23  ;;  %v51_v27 = vld [vmem:[%s1978_s3 + $0xc0] sm:$0xff]  ;;  %v54_v28 = vld [vmem:[%s1978_s3 + $0xd8] sm:$0xff]  ;;  %v61_v30 = vld [vmem:[%s1978_s3 + $0x110] sm:$0xff] }
   0x8   :  { %v58_v29 = vld [vmem:[%s1978_s3 + $0xf8] sm:$0xff]  ;;  %v941_v31 = vpack.c.bf16 %v54_v28, %v51_v27  ;;  %v57_v33 = vld [vmem:[%s1978_s3 + $0xf0] sm:$0xff]  ;;  %v60_v34 = vld [vmem:[%s1978_s3 + $0x108] sm:$0xff] }
   0x9   :  { %930 = vmatpush1.bf16.msra.mxu0 %v929_v13  ;;  %v943_v32 = vpack.c.bf16 %v61_v30, %v58_v29  ;;  %v64_v35 = vld [vmem:[%s1978_s3 + $0x128] sm:$0xff]  ;;  %v67_v36 = vld [vmem:[%s1978_s3 + $0x140] sm:$0xff]  ;;  %v945_v37 = vpack.c.bf16 %v60_v34, %v57_v33  ;;  %v66_v40 = vld [vmem:[%s1978_s3 + $0x138] sm:$0xff] }
   0xa   :  { %932 = vmatprep.subr.bf16.mxu0 %v931_v14  ;;  %v63_v38 = vld [vmem:[%s1978_s3 + $0x120] sm:$0xff]  ;;  %v947_v39 = vpack.c.bf16 %v67_v36, %v64_v35  ;;  %v77_v42 = vld [vmem:[%s1978_s3 + $0x190] sm:$0xff]  ;;  %v70_v43 = vld [vmem:[%s1978_s3 + $0x158] sm:$0xff] }
   0xb   :  { %v1310_v41 = vld.sshfl [vmem:[%s1979_s0] sm:$0x33 pattern:$0x76325410]  ;;  %v73_v44 = vld [vmem:[%s1978_s3 + $0x170] sm:$0xff]  ;;  %v80_v46 = vld [vmem:[%s1978_s3 + $0x1a8] sm:$0xff]  ;;  %v949_v50 = vpack.c.bf16 %v66_v40, %v63_v38 }
   0xc   :  { %v131_v45 = vcombine.high %v1310_v41, %v1310_v41  ;;  %v987_v47 = vpack.c.bf16 %v80_v46, %v77_v42  ;;  %v29_v48 = vld [vmem:[%s1978_s3 + $0x10] sm:$0xff]  ;;  %v32_v49 = vld [vmem:[%s1978_s3 + $0x28] sm:$0xff]  ;;  %v83_v52 = vld [vmem:[%s1978_s3 + $0x1c0] sm:$0xff]  ;;  %v951_v54 = vpack.c.bf16 %v73_v44, %v70_v43 }
   0xd   :  { %934 = vmatpush1.bf16.msra.mxu0 %v933_v19  ;;  %v989_v51 = vpack.c.bf16 %v32_v49, %v29_v48  ;;  %v86_v53 = vld [vmem:[%s1978_s3 + $0x1d8] sm:$0xff]  ;;  %v69_v55 = vld [vmem:[%s1978_s3 + $0x150] sm:$0xff]  ;;  %v72_v56 = vld [vmem:[%s1978_s3 + $0x168] sm:$0xff] }
   0xe   :  { %936 = vmatprep.subr.bf16.mxu0 %v935_v20  ;;  %198 = vmatprep.mubr.f32.mxu0 %v131_v45  ;;  %v991_v57 = vpack.c.bf16 %v86_v53, %v83_v52  ;;  %v35_v58 = vld [vmem:[%s1978_s3 + $0x40] sm:$0xff]  ;;  %v76_v59 = vld [vmem:[%s1978_s3 + $0x188] sm:$0xff]  ;;  %v38_v61 = vld [vmem:[%s1978_s3 + $0x58] sm:$0xff]  ;;  %v953_v1 = vpack.c.bf16 %v72_v56, %v69_v55 }
   0xf   :  { %988 = vmatprep.subr.bf16.mxu1 %v987_v47  ;;  %v79_v60 = vld [vmem:[%s1978_s3 + $0x1a0] sm:$0xff]  ;;  %269 = vmatprep.mubr.f32.mxu1 %v131_v45  ;;  %v993_v62 = vpack.c.bf16 %v38_v61, %v35_v58  ;;  %v89_v63 = vld [vmem:[%s1978_s3 + $0x1f0] sm:$0xff]  ;;  %v92_v0 = vld [vmem:[%s1978_s3 + $0x208] sm:$0xff] }
  0x10   :  { %990 = vmatpush3.bf16.msra.mxu1 %v989_v51  ;;  %v995_v2 = vpack.c.bf16 %v92_v0, %v89_v63  ;;  %v41_v3 = vld [vmem:[%s1978_s3 + $0x70] sm:$0xff]  ;;  %v44_v4 = vld [vmem:[%s1978_s3 + $0x88] sm:$0xff]  ;;  %v955_v5 = vpack.c.bf16 %v79_v60, %v76_v59  ;;  %v75_v6 = vld [vmem:[%s1978_s3 + $0x180] sm:$0xff] }
  0x11   :  { %938 = vmatpush1.bf16.msra.mxu0 %v937_v25  ;;  %992 = vmatprep.subr.bf16.mxu1 %v991_v57  ;;  %v78_v7 = vld [vmem:[%s1978_s3 + $0x198] sm:$0xff]  ;;  %v95_v8 = vld [vmem:[%s1978_s3 + $0x220] sm:$0xff]  ;;  %v85_v10 = vld [vmem:[%s1978_s3 + $0x1d0] sm:$0xff]  ;;  %v997_v11 = vpack.c.bf16 %v44_v4, %v41_v3 }
  0x12   :  { %940 = vmatprep.subr.bf16.mxu0 %v939_v26  ;;  %v82_v9 = vld [vmem:[%s1978_s3 + $0x1b8] sm:$0xff]  ;;  %v47_v14 = vld [vmem:[%s1978_s3 + $0xa0] sm:$0xff]  ;;  %v957_v16 = vpack.c.bf16 %v78_v7, %v75_v6  ;;  %v101_v17 = vld [vmem:[%s1978_s3 + $0x250] sm:$0xff] }
  0x13   :  { %v98_v12 = vld [vmem:[%s1978_s3 + $0x238] sm:$0xff]  ;;  %v104_v18 = vld [vmem:[%s1978_s3 + $0x268] sm:$0xff]  ;;  %v959_v19 = vpack.c.bf16 %v85_v10, %v82_v9  ;;  %v81_v20 = vld [vmem:[%s1978_s3 + $0x1b0] sm:$0xff] }
  0x14   :  { %994 = vmatpush3.bf16.msra.mxu1 %v993_v62  ;;  %v999_v13 = vpack.c.bf16 %v98_v12, %v95_v8  ;;  %v50_v15 = vld [vmem:[%s1978_s3 + $0xb8] sm:$0xff]  ;;  %v84_v21 = vld [vmem:[%s1978_s3 + $0x1c8] sm:$0xff]  ;;  %v91_v23 = vld [vmem:[%s1978_s3 + $0x200] sm:$0xff]  ;;  %v1003_v25 = vpack.c.bf16 %v104_v18, %v101_v17 }
  0x15   :  { %942 = vmatpush1.bf16.msra.mxu0 %v941_v31  ;;  %996 = vmatprep.subr.bf16.mxu1 %v995_v2  ;;  %v88_v22 = vld [vmem:[%s1978_s3 + $0x1e8] sm:$0xff]  ;;  %v1001_v24 = vpack.c.bf16 %v50_v15, %v47_v14  ;;  %v53_v26 = vld [vmem:[%s1978_s3 + $0xd0] sm:$0xff]  ;;  %v961_v28 = vpack.c.bf16 %v84_v21, %v81_v20  ;;  %v107_v29 = vld [vmem:[%s1978_s3 + $0x280] sm:$0xff] }
  0x16   :  { %944 = vmatprep.subr.bf16.mxu0 %v943_v32  ;;  %v56_v27 = vld [vmem:[%s1978_s3 + $0xe8] sm:$0xff]  ;;  %v110_v30 = vld [vmem:[%s1978_s3 + $0x298] sm:$0xff]  ;;  %v963_v31 = vpack.c.bf16 %v91_v23, %v88_v22  ;;  %v87_v32 = vld [vmem:[%s1978_s3 + $0x1e0] sm:$0xff] }
  0x17   :  { %v90_v33 = vld [vmem:[%s1978_s3 + $0x1f8] sm:$0xff]  ;;  %v97_v35 = vld [vmem:[%s1978_s3 + $0x230] sm:$0xff]  ;;  %v1005_v36 = vpack.c.bf16 %v56_v27, %v53_v26  ;;  %v59_v38 = vld [vmem:[%s1978_s3 + $0x100] sm:$0xff] }
  0x18   :  { %998 = vmatpush3.bf16.msra.mxu1 %v997_v11  ;;  %v94_v34 = vld [vmem:[%s1978_s3 + $0x218] sm:$0xff]  ;;  %v965_v40 = vpack.c.bf16 %v90_v33, %v87_v32  ;;  %v113_v42 = vld [vmem:[%s1978_s3 + $0x2b0] sm:$0xff]  ;;  %v116_v43 = vld [vmem:[%s1978_s3 + $0x2c8] sm:$0xff] }
  0x19   :  { %946 = vmatpush1.bf16.msra.mxu0 %v945_v37  ;;  %1000 = vmatprep.subr.bf16.mxu1 %v999_v13  ;;  %v1007_v37 = vpack.c.bf16 %v110_v30, %v107_v29  ;;  %v967_v44 = vpack.c.bf16 %v97_v35, %v94_v34  ;;  %v93_v45 = vld [vmem:[%s1978_s3 + $0x210] sm:$0xff]  ;;  %v96_v46 = vld [vmem:[%s1978_s3 + $0x228] sm:$0xff]  ;;  %v103_v48 = vld [vmem:[%s1978_s3 + $0x260] sm:$0xff] }
  0x1a   :  { %948 = vmatprep.subr.bf16.mxu0 %v947_v39  ;;  %v62_v39 = vld [vmem:[%s1978_s3 + $0x118] sm:$0xff]  ;;  %v100_v47 = vld [vmem:[%s1978_s3 + $0x248] sm:$0xff]  ;;  %v65_v51 = vld [vmem:[%s1978_s3 + $0x130] sm:$0xff]  ;;  %v969_v53 = vpack.c.bf16 %v96_v46, %v93_v45 }
  0x1b   :  { %v1009_v49 = vpack.c.bf16 %v62_v39, %v59_v38  ;;  %v68_v52 = vld [vmem:[%s1978_s3 + $0x148] sm:$0xff]  ;;  %v122_v55 = vld [vmem:[%s1978_s3 + $0x2f8] sm:$0xff]  ;;  %v971_v56 = vpack.c.bf16 %v103_v48, %v100_v47  ;;  %v99_v57 = vld [vmem:[%s1978_s3 + $0x240] sm:$0xff] }
  0x1c   :  { %1002 = vmatpush3.bf16.msra.mxu1 %v1001_v24  ;;  %v102_v58 = vld [vmem:[%s1978_s3 + $0x258] sm:$0xff]  ;;  %v109_v60 = vld [vmem:[%s1978_s3 + $0x290] sm:$0xff]  ;;  %v1013_v61 = vpack.c.bf16 %v68_v52, %v65_v51  ;;  %v71_v63 = vld [vmem:[%s1978_s3 + $0x160] sm:$0xff] }
  0x1d   :  { %950 = vmatpush1.bf16.msra.mxu0 %v949_v50  ;;  %1004 = vmatprep.subr.bf16.mxu1 %v1003_v25  ;;  %v1011_v50 = vpack.c.bf16 %v116_v43, %v113_v42  ;;  %v106_v59 = vld [vmem:[%s1978_s3 + $0x278] sm:$0xff]  ;;  %v345_v2 = vld [vmem:[%s1980_s4 + $0x190] sm:$0xff]  ;;  %v348_v3 = vld [vmem:[%s1980_s4 + $0x1a8] sm:$0xff] }
  0x1e   :  { %952 = vmatprep.subr.bf16.mxu0 %v951_v54  ;;  %v119_v54 = vld [vmem:[%s1978_s3 + $0x2e0] sm:$0xff]  ;;  %v74_v0 = vld [vmem:[%s1978_s3 + $0x178] sm:$0xff]  ;;  %v975_v4 = vpack.c.bf16 %v109_v60, %v106_v59  ;;  %v108_v6 = vld [vmem:[%s1978_s3 + $0x288] sm:$0xff]  ;;  %v1083_v10 = vpack.c.bf16 %v348_v3, %v345_v2 }
  0x1f   :  { %v1015_v62 = vpack.c.bf16 %v122_v55, %v119_v54  ;;  %v112_v7 = vld [vmem:[%s1978_s3 + $0x2a8] sm:$0xff]  ;;  %v115_v8 = vld [vmem:[%s1978_s3 + $0x2c0] sm:$0xff]  ;;  %v1017_v9 = vpack.c.bf16 %v74_v0, %v71_v63  ;;  %v297_v11 = vld [vmem:[%s1980_s4 + $0x10] sm:$0xff] }
  0x20   :  { %1006 = vmatpush3.bf16.msra.mxu1 %v1005_v36  ;;  %v300_v12 = vld [vmem:[%s1980_s4 + $0x28] sm:$0xff]  ;;  %v351_v14 = vld [vmem:[%s1980_s4 + $0x1c0] sm:$0xff]  ;;  %v354_v15 = vld [vmem:[%s1980_s4 + $0x1d8] sm:$0xff] }
  0x21   :  { %954 = vmatpush1.bf16.msra.mxu0 %v953_v1  ;;  %1008 = vmatprep.subr.bf16.mxu1 %v1007_v37  ;;  %v973_v1 = vpack.c.bf16 %v102_v58, %v99_v57  ;;  %v111_v17 = vld [vmem:[%s1978_s3 + $0x2a0] sm:$0xff]  ;;  %v114_v18 = vld [vmem:[%s1978_s3 + $0x2b8] sm:$0xff]  ;;  %v121_v20 = vld [vmem:[%s1978_s3 + $0x2f0] sm:$0xff]  ;;  %v1085_v21 = vpack.c.bf16 %v300_v12, %v297_v11  ;;  %v1087_v22 = vpack.c.bf16 %v354_v15, %v351_v14 }
  0x22   :  { %956 = vmatprep.subr.bf16.mxu0 %v955_v5  ;;  %v105_v5 = vld [vmem:[%s1978_s3 + $0x270] sm:$0xff]  ;;  %v303_v23 = vld [vmem:[%s1980_s4 + $0x40] sm:$0xff]  ;;  %v306_v24 = vld [vmem:[%s1980_s4 + $0x58] sm:$0xff]  ;;  %v981_v25 = vpack.c.bf16 %v114_v18, %v111_v17 }
  0x23   :  { %v977_v13 = vpack.c.bf16 %v108_v6, %v105_v5  ;;  %v357_v26 = vld [vmem:[%s1980_s4 + $0x1f0] sm:$0xff]  ;;  %v360_v27 = vld [vmem:[%s1980_s4 + $0x208] sm:$0xff]  ;;  %v299_v32 = vld [vmem:[%s1980_s4 + $0x20] sm:$0xff]  ;;  %v1089_v33 = vpack.c.bf16 %v306_v24, %v303_v23 }
  0x24   :  { %1010 = vmatpush3.bf16.msra.mxu1 %v1009_v49  ;;  %v117_v29 = vld [vmem:[%s1978_s3 + $0x2d0] sm:$0xff]  ;;  %v120_v30 = vld [vmem:[%s1978_s3 + $0x2e8] sm:$0xff]  ;;  %v1091_v34 = vpack.c.bf16 %v360_v27, %v357_v26  ;;  %v363_v38 = vld [vmem:[%s1980_s4 + $0x220] sm:$0xff] }
  0x25   :  { %958 = vmatpush1.bf16.msra.mxu0 %v957_v16  ;;  %1012 = vmatprep.subr.bf16.mxu1 %v1011_v50  ;;  %v979_v16 = vpack.c.bf16 %v115_v8, %v112_v7  ;;  %v309_v35 = vld [vmem:[%s1980_s4 + $0x70] sm:$0xff]  ;;  %v312_v36 = vld [vmem:[%s1980_s4 + $0x88] sm:$0xff]  ;;  %v985_v37 = vpack.c.bf16 %v120_v30, %v117_v29  ;;  %v366_v39 = vld [vmem:[%s1980_s4 + $0x238] sm:$0xff] }
  0x26   :  { %960 = vmatprep.subr.bf16.mxu0 %v959_v19  ;;  %v118_v19 = vld [vmem:[%s1978_s3 + $0x2d8] sm:$0xff]  ;;  %v295_v42 = vld [vmem:[%s1980_s4] sm:$0xff]  ;;  %v305_v45 = vld [vmem:[%s1980_s4 + $0x50] sm:$0xff]  ;;  %v1093_v46 = vpack.c.bf16 %v312_v36, %v309_v35  ;;  %v1095_v47 = vpack.c.bf16 %v366_v39, %v363_v38 }
  0x27   :  { %v298_v43 = vld [vmem:[%s1980_s4 + $0x18] sm:$0xff]  ;;  %v315_v48 = vld [vmem:[%s1980_s4 + $0xa0] sm:$0xff]  ;;  %v369_v51 = vld [vmem:[%s1980_s4 + $0x250] sm:$0xff] }
  0x28   :  { %1014 = vmatpush3.bf16.msra.mxu1 %v1013_v61  ;;  %v318_v49 = vld [vmem:[%s1980_s4 + $0xb8] sm:$0xff]  ;;  %v1021_v50 = vpack.c.bf16 %v298_v43, %v295_v42  ;;  %v372_v52 = vld [vmem:[%s1980_s4 + $0x268] sm:$0xff]  ;;  %v301_v55 = vld [vmem:[%s1980_s4 + $0x30] sm:$0xff] }
  0x29   :  { %962 = vmatpush1.bf16.msra.mxu0 %v961_v28  ;;  %1016 = vmatprep.subr.bf16.mxu1 %v1015_v62  ;;  %v983_v28 = vpack.c.bf16 %v121_v20, %v118_v19  ;;  %v308_v58 = vld [vmem:[%s1980_s4 + $0x68] sm:$0xff]  ;;  %v311_v59 = vld [vmem:[%s1980_s4 + $0x80] sm:$0xff]  ;;  %v1097_v60 = vpack.c.bf16 %v318_v49, %v315_v48  ;;  %v1099_v61 = vpack.c.bf16 %v372_v52, %v369_v51  ;;  %v321_v62 = vld [vmem:[%s1980_s4 + $0xd0] sm:$0xff] }
  0x2a   :  { %964 = vmatprep.subr.bf16.mxu0 %v963_v31  ;;  %v296_v31 = vld [vmem:[%s1980_s4 + $0x8] sm:$0xff]  ;;  %v1027_v2 = vpack.c.bf16 %v311_v59, %v308_v58  ;;  %v307_v3 = vld [vmem:[%s1980_s4 + $0x60] sm:$0xff]  ;;  %v314_v5 = vld [vmem:[%s1980_s4 + $0x98] sm:$0xff] }
  0x2b   :  { %v324_v63 = vld [vmem:[%s1980_s4 + $0xe8] sm:$0xff]  ;;  %v317_v6 = vld [vmem:[%s1980_s4 + $0xb0] sm:$0xff]  ;;  %v323_v18 = vld [vmem:[%s1980_s4 + $0xe0] sm:$0xff] }
  0x2c   :  { %1018 = vmatpush3.bf16.msra.mxu1 %v1017_v9  ;;  %v1101_v7 = vpack.c.bf16 %v324_v63, %v321_v62  ;;  %v327_v9 = vld [vmem:[%s1980_s4 + $0x100] sm:$0xff]  ;;  %v381_v12 = vld [vmem:[%s1980_s4 + $0x2b0] sm:$0xff]  ;;  %v1031_v14 = vpack.c.bf16 %v317_v6, %v314_v5  ;;  %v320_v17 = vld [vmem:[%s1980_s4 + $0xc8] sm:$0xff] }
  0x2d   :  { %966 = vmatpush1.bf16.msra.mxu0 %v965_v40  ;;  %1084 = vmatprep.subr.bf16.mxu1 %v1083_v10  ;;  %v1019_v40 = vpack.c.bf16 %v299_v32, %v296_v31  ;;  %v330_v10 = vld [vmem:[%s1980_s4 + $0x118] sm:$0xff]  ;;  %v313_v15 = vld [vmem:[%s1980_s4 + $0x90] sm:$0xff]  ;;  %v387_v24 = vld [vmem:[%s1980_s4 + $0x2e0] sm:$0xff]  ;;  %v1035_v26 = vpack.c.bf16 %v323_v18, %v320_v17 }
  0x2e   :  { %968 = vmatprep.subr.bf16.mxu0 %v967_v44  ;;  %v302_v44 = vld [vmem:[%s1980_s4 + $0x38] sm:$0xff]  ;;  %v1105_v19 = vpack.c.bf16 %v330_v10, %v327_v9  ;;  %v319_v27 = vld [vmem:[%s1980_s4 + $0xc0] sm:$0xff]  ;;  %v329_v30 = vld [vmem:[%s1980_s4 + $0x110] sm:$0xff] }
  0x2f   :  { %270 = vmatmul.mubr.f32.vlgmr.msra.gmra.mrb[0].mxu1 %v1310_v41  ;;  %v1023_v54 = vpack.c.bf16 %v305_v45, %v302_v44  ;;  %v326_v29 = vld [vmem:[%s1980_s4 + $0xf8] sm:$0xff]  ;;  %v583_v36 = vld [vmem:[%s1982_s5 + $0x80] sm:$0xff]  ;;  %v325_v39 = vld [vmem:[%s1980_s4 + $0xf0] sm:$0xff] }
  0x30   :  { %1086 = vmatpush3.bf16.msra.mxu1 %v1085_v21  ;;  %v333_v21 = vld [vmem:[%s1980_s4 + $0x130] sm:$0xff]  ;;  %v1039_v38 = vpack.c.bf16 %v329_v30, %v326_v29  ;;  %v332_v42 = vld [vmem:[%s1980_s4 + $0x128] sm:$0xff]  ;;  %v335_v43 = vld [vmem:[%s1980_s4 + $0x140] sm:$0xff] }
  0x31   :  { %970 = vmatpush1.bf16.msra.mxu0 %v969_v53  ;;  %1088 = vmatprep.subr.bf16.mxu1 %v1087_v22  ;;  %v1594_v53 = vld.sshfl [vmem:[%s1981_s1] sm:$0x33 pattern:$0x76325410]  ;;  %v336_v22 = vld [vmem:[%s1980_s4 + $0x148] sm:$0xff]  ;;  %v585_v49 = vld [vmem:[%s1982_s5 + $0x90] sm:$0xff]  ;;  %v1043_v51 = vpack.c.bf16 %v335_v43, %v332_v42 }
  0x32   :  { %972 = vmatprep.subr.bf16.mxu0 %v971_v56  ;;  %v304_v56 = vld [vmem:[%s1980_s4 + $0x48] sm:$0xff]  ;;  %v399_v57 = vcombine.high %v1594_v53, %v1594_v53  ;;  %v1109_v31 = vpack.c.bf16 %v336_v22, %v333_v21  ;;  %v331_v52 = vld [vmem:[%s1980_s4 + $0x120] sm:$0xff]  ;;  %v569_v59 = vld [vmem:[%s1982_s5 + $0x10] sm:$0xff] }
  0x33   :  { %v1025_v0 = vpack.c.bf16 %v304_v56, %v301_v55  ;;  %v338_v55 = vld [vmem:[%s1980_s4 + $0x158] sm:$0xff]  ;;  %v341_v56 = vld [vmem:[%s1980_s4 + $0x170] sm:$0xff]  ;;  %v587_v62 = vld [vmem:[%s1982_s5 + $0xa0] sm:$0xff] }
  0x34   :  { %1090 = vmatpush3.bf16.msra.mxu1 %v1089_v33  ;;  %537 = vmatprep.mubr.f32.mxu1 %v399_v57  ;;  %v339_v33 = vld [vmem:[%s1980_s4 + $0x160] sm:$0xff]  ;;  %v588_v63 = vld [vmem:[%s1982_s5 + $0xa8] sm:$0xff]  ;;  %v589_v9 = vld [vmem:[%s1982_s5 + $0xb0] sm:$0xff] }
  0x35   :  { %974 = vmatpush1.bf16.msra.mxu0 %v973_v1  ;;  %1092 = vmatprep.subr.bf16.mxu1 %v1091_v34  ;;  %v375_v1 = vld [vmem:[%s1980_s4 + $0x280] sm:$0xff]  ;;  %v342_v34 = vld [vmem:[%s1980_s4 + $0x178] sm:$0xff]  ;;  %v1123_v5 = vpack.c.bf16 %v588_v63, %v587_v62  ;;  %v573_v18 = vld [vmem:[%s1982_s5 + $0x30] sm:$0xff] }
  0x36   :  { %976 = vmatprep.subr.bf16.mxu0 %v975_v4  ;;  %v310_v4 = vld [vmem:[%s1980_s4 + $0x78] sm:$0xff]  ;;  %v1113_v44 = vpack.c.bf16 %v342_v34, %v339_v33  ;;  %v571_v6 = vld [vmem:[%s1982_s5 + $0x20] sm:$0xff]  ;;  %v592_v22 = vld [vmem:[%s1982_s5 + $0xc8] sm:$0xff] }
  0x37   :  { %v1029_v11 = vpack.c.bf16 %v310_v4, %v307_v3  ;;  %v347_v3 = vld [vmem:[%s1980_s4 + $0x1a0] sm:$0xff]  ;;  %v590_v10 = vld [vmem:[%s1982_s5 + $0xb8] sm:$0xff]  ;;  %v593_v33 = vld [vmem:[%s1982_s5 + $0xd0] sm:$0xff] }
  0x38   :  { %1094 = vmatpush3.bf16.msra.mxu1 %v1093_v46  ;;  %v567_v46 = vld [vmem:[%s1982_s5] sm:$0xff]  ;;  %v1127_v17 = vpack.c.bf16 %v590_v10, %v589_v9  ;;  %v594_v34 = vld [vmem:[%s1982_s5 + $0xd8] sm:$0xff]  ;;  %v577_v43 = vld [vmem:[%s1982_s5 + $0x50] sm:$0xff] }
  0x39   :  { %978 = vmatpush1.bf16.msra.mxu0 %v977_v13  ;;  %1096 = vmatprep.subr.bf16.mxu1 %v1095_v47  ;;  %v384_v13 = vld [vmem:[%s1980_s4 + $0x2c8] sm:$0xff]  ;;  %v591_v21 = vld [vmem:[%s1982_s5 + $0xc0] sm:$0xff]  ;;  %v1135_v42 = vpack.c.bf16 %v594_v34, %v593_v33  ;;  %v374_v62 = vld [vmem:[%s1980_s4 + $0x278] sm:$0xff] }
  0x3a   :  { %980 = vmatprep.subr.bf16.mxu0 %v979_v16  ;;  %v316_v16 = vld [vmem:[%s1980_s4 + $0xa8] sm:$0xff]  ;;  %v1107_v20 = vpack.c.bf16 %v384_v13, %v381_v12  ;;  %v343_v12 = vld [vmem:[%s1980_s4 + $0x180] sm:$0xff]  ;;  %v346_v13 = vld [vmem:[%s1980_s4 + $0x198] sm:$0xff]  ;;  %v1131_v29 = vpack.c.bf16 %v592_v22, %v591_v21 }
  0x3b   :  { %v1033_v23 = vpack.c.bf16 %v316_v16, %v313_v15  ;;  %v568_v47 = vld [vmem:[%s1982_s5 + $0x8] sm:$0xff]  ;;  %v353_v15 = vld [vmem:[%s1980_s4 + $0x1d0] sm:$0xff]  ;;  %v575_v30 = vld [vmem:[%s1982_s5 + $0x40] sm:$0xff] }
  0x3c   :  { %1098 = vmatpush3.bf16.msra.mxu1 %v1097_v60  ;;  %v570_v60 = vld [vmem:[%s1982_s5 + $0x18] sm:$0xff]  ;;  %v377_v63 = vld [vmem:[%s1980_s4 + $0x290] sm:$0xff] }
  0x3d   :  { %982 = vmatpush1.bf16.msra.mxu0 %v981_v25  ;;  %1100 = vmatprep.subr.bf16.mxu1 %v1099_v61  ;;  %v390_v25 = vld [vmem:[%s1980_s4 + $0x2f8] sm:$0xff]  ;;  %v1121_v4 = vpack.c.bf16 %v570_v60, %v569_v59  ;;  %v367_v60 = vld [vmem:[%s1980_s4 + $0x240] sm:$0xff] }
  0x3e   :  { %984 = vmatprep.subr.bf16.mxu0 %v983_v28  ;;  %v322_v28 = vld [vmem:[%s1980_s4 + $0xd8] sm:$0xff]  ;;  %v1111_v32 = vpack.c.bf16 %v390_v25, %v387_v24  ;;  %v349_v24 = vld [vmem:[%s1980_s4 + $0x1b0] sm:$0xff]  ;;  %v352_v25 = vld [vmem:[%s1980_s4 + $0x1c8] sm:$0xff] }
  0x3f   :  { %v1037_v35 = vpack.c.bf16 %v322_v28, %v319_v27  ;;  %v359_v27 = vld [vmem:[%s1980_s4 + $0x200] sm:$0xff]  ;;  %v382_v9 = vld [vmem:[%s1980_s4 + $0x2b8] sm:$0xff] }
  0x40   :  { %1102 = vmatpush3.bf16.msra.mxu1 %v1101_v7  ;;  %v572_v7 = vld [vmem:[%s1982_s5 + $0x28] sm:$0xff]  ;;  %v386_v10 = vld [vmem:[%s1980_s4 + $0x2d8] sm:$0xff] }
  0x41   :  { %986 = vmatpush1.bf16.msra.mxu0 %v985_v37  ;;  %v584_v37 = vld [vmem:[%s1982_s5 + $0x88] sm:$0xff]  ;;  %v1125_v16 = vpack.c.bf16 %v572_v7, %v571_v6  ;;  %v582_v21 = vld [vmem:[%s1982_s5 + $0x78] sm:$0xff] }
  0x42   :  { %1020 = vmatprep.subr.bf16.mxu0 %v1019_v40  ;;  %v328_v40 = vld [vmem:[%s1980_s4 + $0x108] sm:$0xff]  ;;  %v1115_v45 = vpack.c.bf16 %v584_v37, %v583_v36  ;;  %v355_v36 = vld [vmem:[%s1980_s4 + $0x1e0] sm:$0xff]  ;;  %v358_v37 = vld [vmem:[%s1980_s4 + $0x1f8] sm:$0xff] }
  0x43   :  { %v1041_v48 = vpack.c.bf16 %v328_v40, %v325_v39  ;;  %v365_v39 = vld [vmem:[%s1980_s4 + $0x230] sm:$0xff] }
  0x44   :  { %199 = vmatmul.mubr.f32.vlgmr.msra.gmra.mrb[0].mxu0 %v1310_v41  ;;  %v378_v41 = vld [vmem:[%s1980_s4 + $0x298] sm:$0xff] }
  0x45   :  { %1022 = vmatpush1.bf16.msra.mxu0 %v1021_v50  ;;  %466 = vmatprep.mubr.f32.mxu0 %v399_v57  ;;  %v1103_v8 = vpack.c.bf16 %v378_v41, %v375_v1  ;;  %v586_v50 = vld [vmem:[%s1982_s5 + $0x98] sm:$0xff]  ;;  %v1117_v57 = vpack.c.bf16 %v568_v47, %v567_v46  ;;  %v337_v1 = vld [vmem:[%s1980_s4 + $0x150] sm:$0xff]  ;;  %v340_v41 = vld [vmem:[%s1980_s4 + $0x168] sm:$0xff] }
  0x46   :  { %1024 = vmatprep.subr.bf16.mxu0 %v1023_v54  ;;  %v334_v54 = vld [vmem:[%s1980_s4 + $0x138] sm:$0xff]  ;;  %v1119_v58 = vpack.c.bf16 %v586_v50, %v585_v49  ;;  %v595_v46 = vld [vmem:[%s1982_s5 + $0xe0] sm:$0xff]  ;;  %v596_v47 = vld [vmem:[%s1982_s5 + $0xe8] sm:$0xff] }
  0x47   :  { %1104 = vmatprep.subr.bf16.mxu1 %v1103_v8  ;;  %v1045_v61 = vpack.c.bf16 %v334_v54, %v331_v52  ;;  %v1049_v8 = vpack.c.bf16 %v340_v41, %v337_v1  ;;  %v361_v49 = vld [vmem:[%s1980_s4 + $0x210] sm:$0xff]  ;;  %v364_v50 = vld [vmem:[%s1980_s4 + $0x228] sm:$0xff]  ;;  %v371_v52 = vld [vmem:[%s1980_s4 + $0x260] sm:$0xff]  ;;  %v1071_v41 = vpack.c.bf16 %v377_v63, %v374_v62 }
  0x48   :  { %1106 = vmatpush3.bf16.msra.mxu1 %v1105_v19  ;;  %v574_v19 = vld [vmem:[%s1982_s5 + $0x38] sm:$0xff] }
  0x49   :  { %1026 = vmatpush1.bf16.msra.mxu0 %v1025_v0  ;;  %1108 = vmatprep.subr.bf16.mxu1 %v1107_v20  ;;  %v1047_v0 = vpack.c.bf16 %v341_v56, %v338_v55  ;;  %v1053_v20 = vpack.c.bf16 %v346_v13, %v343_v12  ;;  %v1129_v28 = vpack.c.bf16 %v574_v19, %v573_v18  ;;  %v579_v56 = vld [vmem:[%s1982_s5 + $0x60] sm:$0xff]  ;;  %v598_v18 = vld [vmem:[%s1982_s5 + $0xf8] sm:$0xff] }
  0x4a   :  { %1028 = vmatprep.subr.bf16.mxu0 %v1027_v2  ;;  %v344_v2 = vld [vmem:[%s1980_s4 + $0x188] sm:$0xff]  ;;  %v1139_v55 = vpack.c.bf16 %v596_v47, %v595_v46 }
  0x4c   :  { %1110 = vmatpush3.bf16.msra.mxu1 %v1109_v31  ;;  %v576_v31 = vld [vmem:[%s1982_s5 + $0x48] sm:$0xff] }
  0x4d   :  { %1030 = vmatpush1.bf16.msra.mxu0 %v1029_v11  ;;  %1112 = vmatprep.subr.bf16.mxu1 %v1111_v32  ;;  %v1051_v11 = vpack.c.bf16 %v347_v3, %v344_v2  ;;  %v1057_v32 = vpack.c.bf16 %v352_v25, %v349_v24  ;;  %v1133_v40 = vpack.c.bf16 %v576_v31, %v575_v30  ;;  %v373_v2 = vld [vmem:[%s1980_s4 + $0x270] sm:$0xff]  ;;  %v376_v3 = vld [vmem:[%s1980_s4 + $0x288] sm:$0xff] }
  0x4e   :  { %1032 = vmatprep.subr.bf16.mxu0 %v1031_v14  ;;  %v350_v14 = vld [vmem:[%s1980_s4 + $0x1b8] sm:$0xff]  ;;  %v1073_v6 = vpack.c.bf16 %v376_v3, %v373_v2  ;;  %v607_v2 = vld [vmem:[%s1982_s5 + $0x140] sm:$0xff]  ;;  %v608_v3 = vld [vmem:[%s1982_s5 + $0x148] sm:$0xff] }
  0x50   :  { %1114 = vmatpush3.bf16.msra.mxu1 %v1113_v44  ;;  %v578_v44 = vld [vmem:[%s1982_s5 + $0x58] sm:$0xff] }
  0x51   :  { %1034 = vmatpush1.bf16.msra.mxu0 %v1033_v23  ;;  %1116 = vmatprep.subr.bf16.mxu1 %v1115_v45  ;;  %v1055_v23 = vpack.c.bf16 %v353_v15, %v350_v14  ;;  %v1061_v45 = vpack.c.bf16 %v358_v37, %v355_v36  ;;  %v1137_v54 = vpack.c.bf16 %v578_v44, %v577_v43  ;;  %v385_v14 = vld [vmem:[%s1980_s4 + $0x2d0] sm:$0xff]  ;;  %v388_v15 = vld [vmem:[%s1980_s4 + $0x2e8] sm:$0xff]  ;;  %v1180_v36 = vmov 1983009808   ;;  %v599_v44 = vld [vmem:[%s1982_s5 + $0x100] sm:$0xff] }
  0x52   :  { %1036 = vmatprep.subr.bf16.mxu0 %v1035_v26  ;;  %v356_v26 = vld [vmem:[%s1980_s4 + $0x1e8] sm:$0xff]  ;;  %v551_v37 = vunpack.c.l.s4 %v1180_v36 }
  0x53   :  { %538 = vmatmul.mubr.f32.vlgmr.msra.gmra.mrb[2].mxu1 %v1594_v53 }
  0x54   :  { %1118 = vmatpush3.bf16.msra.mxu1 %v1117_v57  ;;  %v580_v57 = vld [vmem:[%s1982_s5 + $0x68] sm:$0xff] }
  0x55   :  { %1038 = vmatpush1.bf16.msra.mxu0 %v1037_v35  ;;  %1120 = vmatprep.subr.bf16.mxu1 %v1119_v58  ;;  %v1059_v35 = vpack.c.bf16 %v359_v27, %v356_v26  ;;  %v1065_v58 = vpack.c.bf16 %v364_v50, %v361_v49  ;;  %v276_v26 = vlaneseq }
  0x56   :  { %1040 = vmatprep.subr.bf16.mxu0 %v1039_v38  ;;  %v362_v38 = vld [vmem:[%s1980_s4 + $0x218] sm:$0xff] }
  0x57   :  { %v277_v27 = vshrl.u32 %v276_v26, 7 }
  0x58   :  { %1122 = vmatpush3.bf16.msra.mxu1 %v1121_v4  ;;  %v380_v4 = vld [vmem:[%s1980_s4 + $0x2a8] sm:$0xff] }
  0x59   :  { %1042 = vmatpush1.bf16.msra.mxu0 %v1041_v48  ;;  %1124 = vmatprep.subr.bf16.mxu1 %v1123_v5  ;;  %v1063_v48 = vpack.c.bf16 %v365_v39, %v362_v38  ;;  %v383_v5 = vld [vmem:[%s1980_s4 + $0x2c0] sm:$0xff]  ;;  %v278_v38 = vsub.s32 0, %v277_v27  ;;  %v282_v39 = vsub.s32 1, %v277_v27 }
  0x5a   :  { %1044 = vmatprep.subr.bf16.mxu0 %v1043_v51  ;;  %v368_v51 = vld [vmem:[%s1980_s4 + $0x248] sm:$0xff]  ;;  %v1075_v7 = vpack.c.bf16 %v383_v5, %v380_v4  ;;  %v1160_v4 = vpack.c.bf16 %v608_v3, %v607_v2  ;;  %v609_v5 = vld [vmem:[%s1982_s5 + $0x150] sm:$0xff] }
  0x5b   :  { %v1067_v59 = vpack.c.bf16 %v371_v52, %v368_v51  ;;  %v601_v52 = vld [vmem:[%s1982_s5 + $0x110] sm:$0xff] }
  0x5c   :  { %1126 = vmatpush3.bf16.msra.mxu1 %v1125_v16  ;;  %v1081_v16 = vpack.c.bf16 %v388_v15, %v385_v14 }
  0x5d   :  { %1046 = vmatpush1.bf16.msra.mxu0 %v1045_v61  ;;  %1128 = vmatprep.subr.bf16.mxu1 %v1127_v17  ;;  %v370_v61 = vld [vmem:[%s1980_s4 + $0x258] sm:$0xff]  ;;  %v597_v17 = vld [vmem:[%s1982_s5 + $0xf0] sm:$0xff] }
  0x5e   :  { %1048 = vmatprep.subr.bf16.mxu0 %v1047_v0  ;;  %v1141_v0 = vpack.c.bf16 %v580_v57, %v579_v56  ;;  %v1069_v1 = vpack.c.bf16 %v370_v61, %v367_v60  ;;  %v1143_v19 = vpack.c.bf16 %v598_v18, %v597_v17  ;;  %v603_v60 = vld [vmem:[%s1982_s5 + $0x120] sm:$0xff]  ;;  %v604_v61 = vld [vmem:[%s1982_s5 + $0x128] sm:$0xff] }
  0x5f   :  { %v1154_v63 = vpack.c.bf16 %v604_v61, %v603_v60 }
  0x60   :  { %1130 = vmatpush3.bf16.msra.mxu1 %v1129_v28  ;;  %v286_v28 = vsub.s32 2, %v277_v27 }
  0x61   :  { %1050 = vmatpush1.bf16.msra.mxu0 %v1049_v8  ;;  %1132 = vmatprep.subr.bf16.mxu1 %v1131_v29  ;;  %v379_v8 = vld [vmem:[%s1980_s4 + $0x2a0] sm:$0xff] }
  0x62   :  { %1052 = vmatprep.subr.bf16.mxu0 %v1051_v11  ;;  %v389_v11 = vld [vmem:[%s1980_s4 + $0x2f0] sm:$0xff]  ;;  %v1077_v12 = vpack.c.bf16 %v382_v9, %v379_v8  ;;  %v25_v29 = vld [vmem:[%s1983_s2] sm:$0x7]  ;;  %v612_v9 = vld [vmem:[%s1982_s5 + $0x168] sm:$0xff] }
  0x63   :  { %v1079_v13 = vpack.c.bf16 %v389_v11, %v386_v10  ;;  %v287_v30 = vrot.slane %v25_v29, %v286_v28  ;;  %v283_v43 = vrot.slane %v25_v29, %v282_v39  ;;  %v611_v8 = vld [vmem:[%s1982_s5 + $0x160] sm:$0xff]  ;;  %v613_v11 = vld [vmem:[%s1982_s5 + $0x170] sm:$0xff] }
  0x64   :  { %1134 = vmatpush3.bf16.msra.mxu1 %v1133_v40  ;;  %v552_v40 = vunpack.c.0.s8 %v551_v37  ;;  %v1166_v10 = vpack.c.bf16 %v612_v9, %v611_v8 }
  0x65   :  { %1054 = vmatpush1.bf16.msra.mxu0 %v1053_v20  ;;  %1136 = vmatprep.subr.bf16.mxu1 %v1135_v42  ;;  %v581_v20 = vld [vmem:[%s1982_s5 + $0x70] sm:$0xff]  ;;  %v279_v42 = vrot.slane %v25_v29, %v278_v38 }
  0x66   :  { %1056 = vmatprep.subr.bf16.mxu0 %v1055_v23  ;;  %v1145_v22 = vpack.c.bf16 %v582_v21, %v581_v20  ;;  %v555_v47 = vsub.s32 %v552_v40, %v277_v27 }
  0x68   :  { %1138 = vmatpush3.bf16.msra.mxu1 %v1137_v54  ;;  %v602_v54 = vld [vmem:[%s1982_s5 + $0x118] sm:$0xff] }
  0x69   :  { %1058 = vmatpush1.bf16.msra.mxu0 %v1057_v32  ;;  %1140 = vmatprep.subr.bf16.mxu1 %v1139_v55 }
  0x6a   :  { %1060 = vmatprep.subr.bf16.mxu0 %v1059_v35 }
  0x6c   :  { %1142 = vmatpush3.bf16.msra.mxu1 %v1141_v0  ;;  %v605_v0 = vld [vmem:[%s1982_s5 + $0x130] sm:$0xff] }
  0x6d   :  { %1062 = vmatpush1.bf16.msra.mxu0 %v1061_v45  ;;  %1144 = vmatprep.subr.bf16.mxu1 %v1143_v19  ;;  %v600_v45 = vld [vmem:[%s1982_s5 + $0x108] sm:$0xff] }
  0x6e   :  { %1064 = vmatprep.subr.bf16.mxu0 %v1063_v48  ;;  %v1148_v51 = vpack.c.bf16 %v600_v45, %v599_v44 }
  0x70   :  { %1146 = vmatpush3.bf16.msra.mxu1 %v1145_v22 }
  0x71   :  { %1066 = vmatpush1.bf16.msra.mxu0 %v1065_v58  ;;  %v1151_v58 = vpack.c.bf16 %v602_v54, %v601_v52 }
  0x72   :  { %1068 = vmatprep.subr.bf16.mxu0 %v1067_v59  ;;  %v1182_v59 = vmov 0.0  }
  0x75   :  { %1070 = vmatpush1.bf16.msra.mxu0 %v1069_v1  ;;  %v606_v1 = vld [vmem:[%s1982_s5 + $0x138] sm:$0xff] }
  0x76   :  { %1072 = vmatprep.subr.bf16.mxu0 %v1071_v41  ;;  %v1157_v41 = vpack.c.bf16 %v606_v1, %v605_v0 }
  0x79   :  { %1074 = vmatpush1.bf16.msra.mxu0 %v1073_v6  ;;  %v610_v6 = vld [vmem:[%s1982_s5 + $0x158] sm:$0xff] }
  0x7a   :  { %1076 = vmatprep.subr.bf16.mxu0 %v1075_v7  ;;  %v1163_v7 = vpack.c.bf16 %v610_v6, %v609_v5 }
  0x7d   :  { %1078 = vmatpush1.bf16.msra.mxu0 %v1077_v12  ;;  %v614_v12 = vld [vmem:[%s1982_s5 + $0x178] sm:$0xff] }
  0x7e   :  { %1080 = vmatprep.subr.bf16.mxu0 %v1079_v13  ;;  %v1169_v13 = vpack.c.bf16 %v614_v12, %v613_v11 }
  0x81   :  { %1082 = vmatpush1.bf16.msra.mxu0 %v1081_v16 }
  0x84   :  { %467 = vmatmul.mubr.f32.vlgmr.msra.gmra.mrb[0].mxu0 %v1594_v53  ;;  %v1179_v53 = vmov 0.0|0.0  }
  0x85   :  { %1147 = vmatprep.subr.bf16.mxu1 %v1179_v53 }
 0x102   :  { %v798_v23 = vpop.f32.mrb[0].mxu1 }
 0x103   :  { %v799_v24 = vpop.f32.mrb[1].mxu1 }
 0x104   :  { %v800_v25 = vadd.f32 %v799_v24, %v798_v23 }
 0x106   :  { %v293_v31 = vadd.f32 %v800_v25, %v287_v30 }
 0x126   :  { %v833_v32 = vpop.f32.mrb[2].mxu1 }
 0x127   :  { %v834_v33 = vpop.f32.mrb[3].mxu1 }
 0x128   :  { %v835_v34 = vadd.f32 %v834_v33, %v833_v32 }
 0x12a   :  { %v545_v35 = vadd.f32 %v835_v34, %v293_v31 }
 0x12c   :  { %v563_v56 = vrot.slane %v545_v35, %v555_v47 }
 0x157   :  { %v468_v46 = vpop.f32.mrb[0].mxu0 }
 0x158   :  { %v1171_v48 = vadd.f32 %v468_v46, %v279_v42  ;;  %v470_v49 = vpop.f32.mrb[1].mxu0 }
 0x159   :  { %v1172_v50 = vadd.f32 %v470_v49, %v283_v43 }
 0x15b   :  { %v549_v55 = vcombine.low %v1171_v48, %v1172_v50  ;;  %679 = vmatprep.mubr.f32.mxu1 %v1172_v50 }
 0x15c   :  { %680 = vmatmul.mubr.f32.vlgmr.msra.gmra.mrb[4].mxu1 %v1171_v48 }
 0x15d   :  { %v556_v57 = vrot.slane %v549_v55, %v555_v47  ;;  %1149 = vmatpush3.bf16.msra.mxu1 %v1148_v51  ;;  %920 = vmatprep.mubr.msk.f32.mxu1 %vm1181_vm0, %v1182_v59 }
 0x15e   :  { %1150 = vmatprep.subr.bf16.mxu1 %v1179_v53 }
 0x15f   :  { %v564_v62 = vcombine.low %v556_v57, %v563_v56 }
 0x161   :  { %566 = vst [vmem:[%s1984_s6] sm:$0x3f] %v564_v62  ;;  %1152 = vmatpush3.bf16.msra.mxu1 %v1151_v58 }
 0x162   :  { %1153 = vmatprep.subr.bf16.mxu1 %v1179_v53 }
 0x165   :  { %1155 = vmatpush3.bf16.msra.mxu1 %v1154_v63 }
 0x166   :  { %1156 = vmatprep.subr.bf16.mxu1 %v1179_v53 }
 0x169   :  { %1158 = vmatpush3.bf16.msra.mxu1 %v1157_v41 }
 0x16a   :  { %1159 = vmatprep.subr.bf16.mxu1 %v1179_v53 }
 0x16d   :  { %1161 = vmatpush3.bf16.msra.mxu1 %v1160_v4 }
 0x16e   :  { %1162 = vmatprep.subr.bf16.mxu1 %v1179_v53 }
 0x171   :  { %1164 = vmatpush3.bf16.msra.mxu1 %v1163_v7 }
 0x172   :  { %1165 = vmatprep.subr.bf16.mxu1 %v1179_v53 }
 0x175   :  { %1167 = vmatpush3.bf16.msra.mxu1 %v1166_v10 }
 0x176   :  { %1168 = vmatprep.subr.bf16.mxu1 %v1179_v53 }
 0x179   :  { %1170 = vmatpush3.bf16.msra.mxu1 %v1169_v13 }
 0x17c   :  { %921 = vmatmul.mubr.f32.vlgmr.msra.gmra.mrb[6].mxu1 %v545_v35 }
 0x22f   :  { %v868_v14 = vpop.f32.mrb[4].mxu1 }
 0x230   :  { %v869_v15 = vpop.f32.mrb[5].mxu1 }
 0x231   :  { %v870_v16 = vadd.f32 %v869_v15, %v868_v14 }
 0x24f   :  { %v751_v17 = vpop.f32.mrb[6].mxu1 }
 0x250   :  { %v752_v18 = vadd.f32 %v870_v16, %v751_v17  ;;  %v922_v19 = vpop.f32.mrb[7].mxu1 }
 0x252   :  { %755 = vst [vmem:[%s1985_s7] sm:$0x3] %v752_v18 }

</bundles_post_ra>
